<compile_context>
chip_gen: v6e
topology: v6e:2x2x1
jax: 0.10.0
libtpu: 0.0.40
codegen_flags: <defaults>
</compile_context>

<pallas_src>
import functools

import jax
import jax.numpy as jnp
from jax.experimental import pallas as pl
from jax.experimental.pallas import tpu as pltpu

_LANE = 128


def _dwsep_kernel(xp_ref, dw_ref, pw_ref, bias_ref, o_ref, *, Wp, TH, use_residual):
    """One (batch, row-tile) grid step.

    xp_ref:   (1, H+2, Wp+2, Cip) zero-padded input image (resident across row tiles), bf16
    dw_ref:   (9, Cip)            depthwise taps, row k = tap (k//3, k%3), f32
    pw_ref:   (Cip, Cop)          pointwise weights with BN scale folded in, bf16
    bias_ref: (1, Cop)            folded BN bias, f32
    o_ref:    (1, TH, Wp, Cop)    output row tile
    """
    h = pl.program_id(1)
    row0 = pl.multiple_of(h * TH, TH)

    dw = dw_ref[...]                                     # (9, Cip) f32, tiny

    # --- Streaming depthwise 3x3 (stride 1, padding pre-applied) ---------------------
    # Single running accumulator; each tap is loaded from the VMEM-resident ref right
    # before its FMA, so live ranges stay at ~one tap + one accumulator chain.
    acc = None
    for dy in range(3):
        for dx in range(3):
            tap = xp_ref[0, pl.ds(row0 + dy, TH), pl.ds(dx, Wp), :].astype(jnp.float32)
            term = tap * dw[3 * dy + dx]                 # (TH, Wp, Cip) f32
            acc = term if acc is None else acc + term

    # --- Pointwise 1x1 conv (+ folded BN scale): one MXU matmul, bf16 in / f32 acc ---
    cip = acc.shape[-1]
    z = jnp.dot(acc.reshape(TH * Wp, cip).astype(jnp.bfloat16), pw_ref[...],
                preferred_element_type=jnp.float32)      # (TH*Wp, Cop)

    # Folded BN bias + ReLU.
    z = jnp.maximum(z + bias_ref[...], 0.0)
    cop = z.shape[-1]
    z = z.reshape(TH, Wp, cop)

    if use_residual:
        # Cin == Cout => Cip == Cop.  Re-slice the input window from the ref (cheap vld)
        # so nothing large stays live across the matmul.  Zero-padded channels / columns
        # stay exactly zero through the add.
        res = xp_ref[0, pl.ds(row0 + 1, TH), pl.ds(1, Wp), :].astype(jnp.float32)
        z = z + res

    o_ref[0] = z.astype(o_ref.dtype)


def _round_up(x, m):
    return (x + m - 1) // m * m


def _pick_row_tile(H, Wp):
    """Row tile: multiple-of-8 divisor of H targeting M = TH*Wp >= 512 matmul rows."""
    cands = [th for th in range(8, H + 1, 8) if H % th == 0]
    if not cands:
        return H                                  # tiny / awkward H: single row tile
    piped = [th for th in cands if H // th >= 2] or cands   # keep >=2 tiles if possible
    for th in piped:                              # smallest tile reaching the M target
        if th * Wp >= 512:
            return th
    return piped[-1]                              # else: biggest tile that still pipelines


def depthwise_separable_conv(x_nchw, dw_weight, pw_weight, bn_gamma, bn_beta,
                             bn_mean, bn_var, *, stride=1, use_residual=False,
                             eps=1e-5):
    """Forward pass matching the PyTorch DepthwiseSeparableConv module (BN in eval mode).

    x_nchw:    (N, Cin, H, W)     float32
    dw_weight: (Cin, 1, 3, 3)     depthwise Conv2d weight (groups=Cin, bias=False)
    pw_weight: (Cout, Cin, 1, 1)  pointwise Conv2d weight (bias=False)
    bn_*:      (Cout,)            BatchNorm2d params / running stats
    """
    assert stride == 1  # TODO(synk): stride > 1 not implemented in this kernel.
    N, Cin, H, W = x_nchw.shape
    Cout = pw_weight.shape[0]
    if use_residual:
        assert Cin == Cout

    Cip = _round_up(Cin, _LANE)
    Cop = _round_up(Cout, _LANE)
    Wp = _round_up(W, 8)
    TH = _pick_row_tile(H, Wp)

    # --- wrapper glue: layout + parameter folding --------------------------------------
    xp = jnp.transpose(x_nchw, (0, 2, 3, 1))                          # NCHW -> NHWC
    xp = jnp.pad(xp, ((0, 0), (1, 1), (1, 1 + Wp - W), (0, Cip - Cin)))  # halo + lane pad
    xp = xp.astype(jnp.bfloat16)                                      # bf16 storage

    dw = jnp.transpose(dw_weight[:, 0, :, :], (1, 2, 0)).reshape(9, Cin)
    dw = jnp.pad(dw, ((0, 0), (0, Cip - Cin))).astype(jnp.float32)

    inv = bn_gamma / jnp.sqrt(bn_var + eps)                           # (Cout,)
    pw = jnp.transpose(pw_weight[:, :, 0, 0], (1, 0)) * inv[None, :]  # BN scale folded in
    pw = jnp.pad(pw, ((0, Cip - Cin), (0, Cop - Cout))).astype(jnp.bfloat16)
    bias = jnp.pad(bn_beta - bn_mean * inv, (0, Cop - Cout)).reshape(1, Cop)
    bias = bias.astype(jnp.float32)

    kernel = functools.partial(_dwsep_kernel, Wp=Wp, TH=TH, use_residual=use_residual)
    grid = (N, H // TH)

    # VMEM budget from actual buffer sizes (double-buffered blocks + big intermediates).
    itemsize = x_nchw.dtype.itemsize
    xp_blk = (H + 2) * (Wp + 2) * Cip * 2
    const_blk = 9 * Cip * 4 + Cip * Cop * 2 + Cop * 4
    out_blk = TH * Wp * Cop * itemsize
    interm = TH * Wp * (Cip + Cop) * 4
    vmem_limit = int(min(max(2 * (xp_blk + const_blk + out_blk) + interm + (4 << 20),
                             16 << 20), 64 << 20))

    flops = int(N * H * Wp * Cip * (18 + 2 * Cop))
    bytes_accessed = int(N * xp_blk + const_blk + N * H * Wp * Cop * itemsize)

    out_nhwc = pl.pallas_call(
        kernel,
        out_shape=jax.ShapeDtypeStruct((N, H, Wp, Cop), x_nchw.dtype),
        grid_spec=pltpu.PrefetchScalarGridSpec(
            num_scalar_prefetch=0,
            grid=grid,
            in_specs=[
                # Whole padded image stays resident across the row-tile axis; the kernel
                # selects each tap window with pl.ds.
                pl.BlockSpec((1, H + 2, Wp + 2, Cip), lambda n, h: (n, 0, 0, 0)),
                pl.BlockSpec((9, Cip), lambda n, h: (0, 0)),
                pl.BlockSpec((Cip, Cop), lambda n, h: (0, 0)),
                pl.BlockSpec((1, Cop), lambda n, h: (0, 0)),
            ],
            out_specs=pl.BlockSpec((1, TH, Wp, Cop), lambda n, h: (n, h, 0, 0)),
        ),
        compiler_params=pltpu.CompilerParams(
            dimension_semantics=("parallel", "parallel"),
            vmem_limit_bytes=vmem_limit),
        cost_estimate=pl.CostEstimate(flops=flops, transcendentals=0,
                                      bytes_accessed=bytes_accessed),
    )(xp, dw, pw, bias)

    out_nhwc = out_nhwc[:, :, :W, :Cout]                              # drop width/channel pad
    return jnp.transpose(out_nhwc, (0, 3, 1, 2))                      # NHWC -> NCHW


# --- pure-JAX reference (for correctness check only) -------------------------------------
def _reference(x, dw_weight, pw_weight, gamma, beta, mean, var, *, eps=1e-5,
               use_residual=False):
    z = jax.lax.conv_general_dilated(
        x, dw_weight, window_strides=(1, 1), padding=((1, 1), (1, 1)),
        dimension_numbers=("NCHW", "OIHW", "NCHW"),
        feature_group_count=x.shape[1])
    z = jax.lax.conv_general_dilated(
        z, pw_weight, window_strides=(1, 1), padding="VALID",
        dimension_numbers=("NCHW", "OIHW", "NCHW"))
    c = z.shape[1]
    z = ((z - mean.reshape(1, c, 1, 1)) / jnp.sqrt(var.reshape(1, c, 1, 1) + eps)
         * gamma.reshape(1, c, 1, 1) + beta.reshape(1, c, 1, 1))
    z = jnp.maximum(z, 0.0)
    return z + x if use_residual else z


if __name__ == "__main__":
    key = jax.random.PRNGKey(0)

    def make_params(key, cin, cout):
        k = jax.random.split(key, 6)
        dw_w = 0.1 * jax.random.normal(k[0], (cin, 1, 3, 3), jnp.float32)
        pw_w = 0.1 * jax.random.normal(k[1], (cout, cin, 1, 1), jnp.float32)
        gamma = 1.0 + 0.1 * jax.random.normal(k[2], (cout,), jnp.float32)
        beta = 0.1 * jax.random.normal(k[3], (cout,), jnp.float32)
        mean = 0.1 * jax.random.normal(k[4], (cout,), jnp.float32)
        var = jnp.abs(jax.random.normal(k[5], (cout,), jnp.float32)) + 0.5
        return dw_w, pw_w, gamma, beta, mean, var

    N, H, W = 2, 16, 16
    # bf16 input storage + bf16 MXU feed => looser-than-f32 tolerance.
    RTOL, ATOL = 1e-2, 1e-2

    # Case 1: in=4, out=8, no residual (module defaults: stride=1, use_residual=False)
    k1, k2, kx1, kx2 = jax.random.split(key, 4)
    x1 = jax.random.normal(kx1, (N, 4, H, W), jnp.float32)
    p1 = make_params(k1, 4, 8)
    out1 = jax.block_until_ready(depthwise_separable_conv(x1, *p1, use_residual=False))
    ref1 = _reference(x1, *p1, use_residual=False)
    assert jnp.allclose(out1, ref1, rtol=RTOL, atol=ATOL), "mismatch (no residual)"

    # Case 2: in=out=4 with residual connection
    x2 = jax.random.normal(kx2, (N, 4, H, W), jnp.float32)
    p2 = make_params(k2, 4, 4)
    out2 = jax.block_until_ready(depthwise_separable_conv(x2, *p2, use_residual=True))
    ref2 = _reference(x2, *p2, use_residual=True)
    assert jnp.allclose(out2, ref2, rtol=RTOL, atol=ATOL), "mismatch (residual)"

    print("KERNEL_OK")
</pallas_src>

<mosaic_0001>
module attributes {stable_mosaic.version = 11 : i64} {
  func.func @_dwsep_kernel(%arg0: i32, %arg1: i32, %arg2: memref<1x18x18x128xbf16, #tpu.memory_space<vmem>>, %arg3: memref<9x128xf32, #tpu.memory_space<vmem>>, %arg4: memref<128x128xbf16, #tpu.memory_space<vmem>>, %arg5: memref<1x128xf32, #tpu.memory_space<vmem>>, %arg6: memref<1x8x16x128xf32, #tpu.memory_space<vmem>>) attributes {dimension_semantics = [#tpu.dimension_semantics<parallel>, #tpu.dimension_semantics<parallel>], iteration_bounds = array<i64: 2, 2>, scalar_prefetch = 0 : i64, scratch_operands = 0 : i64, tpu.core_type = #tpu.core_type<tc>, window_params = [{transform_indices = @transform_0, window_bounds = array<i64: 1, 18, 18, 128>}, {pipeline_mode = #tpu.pipeline_mode<synchronous>, transform_indices = @transform_1, window_bounds = array<i64: 9, 128>}, {pipeline_mode = #tpu.pipeline_mode<synchronous>, transform_indices = @transform_2, window_bounds = array<i64: 128, 128>}, {pipeline_mode = #tpu.pipeline_mode<synchronous>, transform_indices = @transform_3, window_bounds = array<i64: 1, 128>}, {transform_indices = @transform_4, window_bounds = array<i64: 1, 8, 16, 128>}]} {
    %c8_i32 = arith.constant 8 : i32
    %0 = arith.muli %arg1, %c8_i32 : i32
    %1 = tpu.assume_multiple %0, 8 : i32
    %c0 = arith.constant 0 : index
    %c0_0 = arith.constant 0 : index
    %2 = vector.load %arg3[%c0, %c0_0] : memref<9x128xf32, #tpu.memory_space<vmem>>, vector<9x128xf32>
    %c0_i32 = arith.constant 0 : i32
    %3 = arith.addi %1, %c0_i32 : i32
    %c0_1 = arith.constant 0 : index
    %4 = arith.index_cast %3 : i32 to index
    %c0_2 = arith.constant 0 : index
    %c0_3 = arith.constant 0 : index
    %5 = vector.load %arg2[%c0_1, %4, %c0_2, %c0_3] : memref<1x18x18x128xbf16, #tpu.memory_space<vmem>>, vector<1x8x16x128xbf16>
    %6 = vector.shape_cast %5 : vector<1x8x16x128xbf16> to vector<8x16x128xbf16>
    %7 = arith.extf %6 : vector<8x16x128xbf16> to vector<8x16x128xf32>
    %8 = vector.extract_strided_slice %2 {offsets = [0, 0], sizes = [1, 128], strides = [1, 1]} : vector<9x128xf32> to vector<1x128xf32>
    %9 = vector.shape_cast %8 : vector<1x128xf32> to vector<128xf32>
    %10 = vector.shape_cast %9 : vector<128xf32> to vector<1x1x128xf32>
    %11 = vector.broadcast %10 : vector<1x1x128xf32> to vector<8x16x128xf32>
    %12 = arith.mulf %7, %11 : vector<8x16x128xf32>
    %c0_i32_4 = arith.constant 0 : i32
    %13 = arith.addi %1, %c0_i32_4 : i32
    %c0_5 = arith.constant 0 : index
    %14 = arith.index_cast %13 : i32 to index
    %c1 = arith.constant 1 : index
    %c0_6 = arith.constant 0 : index
    %15 = vector.load %arg2[%c0_5, %14, %c1, %c0_6] : memref<1x18x18x128xbf16, #tpu.memory_space<vmem>>, vector<1x8x16x128xbf16>
    %16 = vector.shape_cast %15 : vector<1x8x16x128xbf16> to vector<8x16x128xbf16>
    %17 = arith.extf %16 : vector<8x16x128xbf16> to vector<8x16x128xf32>
    %18 = vector.extract_strided_slice %2 {offsets = [1, 0], sizes = [1, 128], strides = [1, 1]} : vector<9x128xf32> to vector<1x128xf32>
    %19 = vector.shape_cast %18 : vector<1x128xf32> to vector<128xf32>
    %20 = vector.shape_cast %19 : vector<128xf32> to vector<1x1x128xf32>
    %21 = vector.broadcast %20 : vector<1x1x128xf32> to vector<8x16x128xf32>
    %22 = arith.mulf %17, %21 : vector<8x16x128xf32>
    %23 = arith.addf %12, %22 : vector<8x16x128xf32>
    %c0_i32_7 = arith.constant 0 : i32
    %24 = arith.addi %1, %c0_i32_7 : i32
    %c0_8 = arith.constant 0 : index
    %25 = arith.index_cast %24 : i32 to index
    %c2 = arith.constant 2 : index
    %c0_9 = arith.constant 0 : index
    %26 = vector.load %arg2[%c0_8, %25, %c2, %c0_9] : memref<1x18x18x128xbf16, #tpu.memory_space<vmem>>, vector<1x8x16x128xbf16>
    %27 = vector.shape_cast %26 : vector<1x8x16x128xbf16> to vector<8x16x128xbf16>
    %28 = arith.extf %27 : vector<8x16x128xbf16> to vector<8x16x128xf32>
    %29 = vector.extract_strided_slice %2 {offsets = [2, 0], sizes = [1, 128], strides = [1, 1]} : vector<9x128xf32> to vector<1x128xf32>
    %30 = vector.shape_cast %29 : vector<1x128xf32> to vector<128xf32>
    %31 = vector.shape_cast %30 : vector<128xf32> to vector<1x1x128xf32>
    %32 = vector.broadcast %31 : vector<1x1x128xf32> to vector<8x16x128xf32>
    %33 = arith.mulf %28, %32 : vector<8x16x128xf32>
    %34 = arith.addf %23, %33 : vector<8x16x128xf32>
    %c1_i32 = arith.constant 1 : i32
    %35 = arith.addi %1, %c1_i32 : i32
    %c0_10 = arith.constant 0 : index
    %36 = arith.index_cast %35 : i32 to index
    %c0_11 = arith.constant 0 : index
    %c0_12 = arith.constant 0 : index
    %37 = vector.load %arg2[%c0_10, %36, %c0_11, %c0_12] : memref<1x18x18x128xbf16, #tpu.memory_space<vmem>>, vector<1x8x16x128xbf16>
    %38 = vector.shape_cast %37 : vector<1x8x16x128xbf16> to vector<8x16x128xbf16>
    %39 = arith.extf %38 : vector<8x16x128xbf16> to vector<8x16x128xf32>
    %40 = vector.extract_strided_slice %2 {offsets = [3, 0], sizes = [1, 128], strides = [1, 1]} : vector<9x128xf32> to vector<1x128xf32>
    %41 = vector.shape_cast %40 : vector<1x128xf32> to vector<128xf32>
    %42 = vector.shape_cast %41 : vector<128xf32> to vector<1x1x128xf32>
    %43 = vector.broadcast %42 : vector<1x1x128xf32> to vector<8x16x128xf32>
    %44 = arith.mulf %39, %43 : vector<8x16x128xf32>
    %45 = arith.addf %34, %44 : vector<8x16x128xf32>
    %c1_i32_13 = arith.constant 1 : i32
    %46 = arith.addi %1, %c1_i32_13 : i32
    %c0_14 = arith.constant 0 : index
    %47 = arith.index_cast %46 : i32 to index
    %c1_15 = arith.constant 1 : index
    %c0_16 = arith.constant 0 : index
    %48 = vector.load %arg2[%c0_14, %47, %c1_15, %c0_16] : memref<1x18x18x128xbf16, #tpu.memory_space<vmem>>, vector<1x8x16x128xbf16>
    %49 = vector.shape_cast %48 : vector<1x8x16x128xbf16> to vector<8x16x128xbf16>
    %50 = arith.extf %49 : vector<8x16x128xbf16> to vector<8x16x128xf32>
    %51 = vector.extract_strided_slice %2 {offsets = [4, 0], sizes = [1, 128], strides = [1, 1]} : vector<9x128xf32> to vector<1x128xf32>
    %52 = vector.shape_cast %51 : vector<1x128xf32> to vector<128xf32>
    %53 = vector.shape_cast %52 : vector<128xf32> to vector<1x1x128xf32>
    %54 = vector.broadcast %53 : vector<1x1x128xf32> to vector<8x16x128xf32>
    %55 = arith.mulf %50, %54 : vector<8x16x128xf32>
    %56 = arith.addf %45, %55 : vector<8x16x128xf32>
    %c1_i32_17 = arith.constant 1 : i32
    %57 = arith.addi %1, %c1_i32_17 : i32
    %c0_18 = arith.constant 0 : index
    %58 = arith.index_cast %57 : i32 to index
    %c2_19 = arith.constant 2 : index
    %c0_20 = arith.constant 0 : index
    %59 = vector.load %arg2[%c0_18, %58, %c2_19, %c0_20] : memref<1x18x18x128xbf16, #tpu.memory_space<vmem>>, vector<1x8x16x128xbf16>
    %60 = vector.shape_cast %59 : vector<1x8x16x128xbf16> to vector<8x16x128xbf16>
    %61 = arith.extf %60 : vector<8x16x128xbf16> to vector<8x16x128xf32>
    %62 = vector.extract_strided_slice %2 {offsets = [5, 0], sizes = [1, 128], strides = [1, 1]} : vector<9x128xf32> to vector<1x128xf32>
    %63 = vector.shape_cast %62 : vector<1x128xf32> to vector<128xf32>
    %64 = vector.shape_cast %63 : vector<128xf32> to vector<1x1x128xf32>
    %65 = vector.broadcast %64 : vector<1x1x128xf32> to vector<8x16x128xf32>
    %66 = arith.mulf %61, %65 : vector<8x16x128xf32>
    %67 = arith.addf %56, %66 : vector<8x16x128xf32>
    %c2_i32 = arith.constant 2 : i32
    %68 = arith.addi %1, %c2_i32 : i32
    %c0_21 = arith.constant 0 : index
    %69 = arith.index_cast %68 : i32 to index
    %c0_22 = arith.constant 0 : index
    %c0_23 = arith.constant 0 : index
    %70 = vector.load %arg2[%c0_21, %69, %c0_22, %c0_23] : memref<1x18x18x128xbf16, #tpu.memory_space<vmem>>, vector<1x8x16x128xbf16>
    %71 = vector.shape_cast %70 : vector<1x8x16x128xbf16> to vector<8x16x128xbf16>
    %72 = arith.extf %71 : vector<8x16x128xbf16> to vector<8x16x128xf32>
    %73 = vector.extract_strided_slice %2 {offsets = [6, 0], sizes = [1, 128], strides = [1, 1]} : vector<9x128xf32> to vector<1x128xf32>
    %74 = vector.shape_cast %73 : vector<1x128xf32> to vector<128xf32>
    %75 = vector.shape_cast %74 : vector<128xf32> to vector<1x1x128xf32>
    %76 = vector.broadcast %75 : vector<1x1x128xf32> to vector<8x16x128xf32>
    %77 = arith.mulf %72, %76 : vector<8x16x128xf32>
    %78 = arith.addf %67, %77 : vector<8x16x128xf32>
    %c2_i32_24 = arith.constant 2 : i32
    %79 = arith.addi %1, %c2_i32_24 : i32
    %c0_25 = arith.constant 0 : index
    %80 = arith.index_cast %79 : i32 to index
    %c1_26 = arith.constant 1 : index
    %c0_27 = arith.constant 0 : index
    %81 = vector.load %arg2[%c0_25, %80, %c1_26, %c0_27] : memref<1x18x18x128xbf16, #tpu.memory_space<vmem>>, vector<1x8x16x128xbf16>
    %82 = vector.shape_cast %81 : vector<1x8x16x128xbf16> to vector<8x16x128xbf16>
    %83 = arith.extf %82 : vector<8x16x128xbf16> to vector<8x16x128xf32>
    %84 = vector.extract_strided_slice %2 {offsets = [7, 0], sizes = [1, 128], strides = [1, 1]} : vector<9x128xf32> to vector<1x128xf32>
    %85 = vector.shape_cast %84 : vector<1x128xf32> to vector<128xf32>
    %86 = vector.shape_cast %85 : vector<128xf32> to vector<1x1x128xf32>
    %87 = vector.broadcast %86 : vector<1x1x128xf32> to vector<8x16x128xf32>
    %88 = arith.mulf %83, %87 : vector<8x16x128xf32>
    %89 = arith.addf %78, %88 : vector<8x16x128xf32>
    %c2_i32_28 = arith.constant 2 : i32
    %90 = arith.addi %1, %c2_i32_28 : i32
    %c0_29 = arith.constant 0 : index
    %91 = arith.index_cast %90 : i32 to index
    %c2_30 = arith.constant 2 : index
    %c0_31 = arith.constant 0 : index
    %92 = vector.load %arg2[%c0_29, %91, %c2_30, %c0_31] : memref<1x18x18x128xbf16, #tpu.memory_space<vmem>>, vector<1x8x16x128xbf16>
    %93 = vector.shape_cast %92 : vector<1x8x16x128xbf16> to vector<8x16x128xbf16>
    %94 = arith.extf %93 : vector<8x16x128xbf16> to vector<8x16x128xf32>
    %95 = vector.extract_strided_slice %2 {offsets = [8, 0], sizes = [1, 128], strides = [1, 1]} : vector<9x128xf32> to vector<1x128xf32>
    %96 = vector.shape_cast %95 : vector<1x128xf32> to vector<128xf32>
    %97 = vector.shape_cast %96 : vector<128xf32> to vector<1x1x128xf32>
    %98 = vector.broadcast %97 : vector<1x1x128xf32> to vector<8x16x128xf32>
    %99 = arith.mulf %94, %98 : vector<8x16x128xf32>
    %100 = arith.addf %89, %99 : vector<8x16x128xf32>
    %101 = vector.shape_cast %100 : vector<8x16x128xf32> to vector<128x128xf32>
    %102 = arith.truncf %101 : vector<128x128xf32> to vector<128x128xbf16>
    %c0_32 = arith.constant 0 : index
    %c0_33 = arith.constant 0 : index
    %103 = vector.load %arg4[%c0_32, %c0_33] : memref<128x128xbf16, #tpu.memory_space<vmem>>, vector<128x128xbf16>
    %cst = arith.constant dense<0.000000e+00> : vector<128x128xf32>
    %104 = tpu.matmul %102, %103, %cst {dimension_numbers = #tpu.dot_dimension_numbers<[1], [0], [0], [1], [0, 0, 1, 1], [], []>} : vector<128x128xbf16>, vector<128x128xbf16>, vector<128x128xf32> -> vector<128x128xf32>
    %c0_34 = arith.constant 0 : index
    %c0_35 = arith.constant 0 : index
    %105 = vector.load %arg5[%c0_34, %c0_35] : memref<1x128xf32, #tpu.memory_space<vmem>>, vector<1x128xf32>
    %106 = vector.broadcast %105 : vector<1x128xf32> to vector<128x128xf32>
    %107 = arith.addf %104, %106 : vector<128x128xf32>
    %cst_36 = arith.constant 0.000000e+00 : f32
    %108 = vector.broadcast %cst_36 : f32 to vector<128x128xf32>
    %109 = arith.maximumf %107, %108 : vector<128x128xf32>
    %110 = vector.shape_cast %109 : vector<128x128xf32> to vector<8x16x128xf32>
    %c0_37 = arith.constant 0 : index
    %c0_38 = arith.constant 0 : index
    %c0_39 = arith.constant 0 : index
    %c0_40 = arith.constant 0 : index
    %111 = vector.load %arg6[%c0_37, %c0_38, %c0_39, %c0_40] : memref<1x8x16x128xf32, #tpu.memory_space<vmem>>, vector<1x8x16x128xf32>
    %112 = vector.shape_cast %111 : vector<1x8x16x128xf32> to vector<8x16x128xf32>
    %113 = vector.shape_cast %110 : vector<8x16x128xf32> to vector<1x8x16x128xf32>
    tpu.vector_store %arg6[%c0_37, %c0_38, %c0_39, %c0_40], %113 {strides = array<i32>} : memref<1x8x16x128xf32, #tpu.memory_space<vmem>>, vector<1x8x16x128xf32>,
    return
  }
  func.func @transform_0(%arg0: i32, %arg1: i32) -> (i32, i32, i32, i32) {
    %c0_i32 = arith.constant 0 : i32
    %c0_i32_0 = arith.constant 0 : i32
    %c0_i32_1 = arith.constant 0 : i32
    %c0_i32_2 = arith.constant 0 : i32
    return %arg0, %c0_i32, %c0_i32_0, %c0_i32_1 : i32, i32, i32, i32
  }
  func.func @transform_1(%arg0: i32, %arg1: i32) -> (i32, i32) {
    %c0_i32 = arith.constant 0 : i32
    %c0_i32_0 = arith.constant 0 : i32
    %c0_i32_1 = arith.constant 0 : i32
    return %c0_i32, %c0_i32_0 : i32, i32
  }
  func.func @transform_2(%arg0: i32, %arg1: i32) -> (i32, i32) {
    %c0_i32 = arith.constant 0 : i32
    %c0_i32_0 = arith.constant 0 : i32
    %c0_i32_1 = arith.constant 0 : i32
    return %c0_i32, %c0_i32_0 : i32, i32
  }
  func.func @transform_3(%arg0: i32, %arg1: i32) -> (i32, i32) {
    %c0_i32 = arith.constant 0 : i32
    %c0_i32_0 = arith.constant 0 : i32
    %c0_i32_1 = arith.constant 0 : i32
    return %c0_i32, %c0_i32_0 : i32, i32
  }
  func.func @transform_4(%arg0: i32, %arg1: i32) -> (i32, i32, i32, i32) {
    %c0_i32 = arith.constant 0 : i32
    %c0_i32_0 = arith.constant 0 : i32
    %c0_i32_1 = arith.constant 0 : i32
    return %arg0, %arg1, %c0_i32, %c0_i32_0 : i32, i32, i32, i32
  }
}

</mosaic_0001>

<bundles_post_ra>
// kernel: tpu_custom_call.1
= control target key start
LH: loop header
LB: loop body
LE: loop exit
PB: predicated region body
PF: predicated region fallthrough
CT: control target
= control target key end

     0   :  { %9 = vsyncpa [#allocation3], 0  ;;  %s2679_s0 = inlined_call_operand.vmem [shape: bf16[2,18,18,128], index: 0, kind: input, shape index: {}]   ;;  %s2680_s1 = inlined_call_operand.vmem [shape: f32[9,128], index: 1, kind: input, shape index: {}]   ;;  %s2681_s2 = inlined_call_operand.vmem [shape: bf16[128,128], index: 2, kind: input, shape index: {}]   ;;  %s2682_s3 = inlined_call_operand.vmem [shape: f32[1,128], index: 3, kind: input, shape index: {}]   ;;  %s2683_s4 = inlined_call_operand.hbm [shape: f32[2,16,16,128], index: 4, kind: output, shape index: {}]  }
   0x1   :  { %11 = vsyncpa [#allocation3 + $0x1], 0  ;;  %s1992_s15 = smov 0   ;;  %s1994_s16 = smov 0  }
   0x2   :  { %s1996_s17 = smov 0   ;;  %s1998_s18 = smov 0  }
   0x3   :  { %s2000_s19 = smov 0   ;;  %s2002_s20 = smov 0  }
   0x4   :  { %s2004_s21 = smov 0   ;;  %s2006_s22 = smov 0  }
   0x5 LB: > { %s1567_s23 = sadd.s32 4294967295, %s1962_s22   ;;  %s1568_s24 = sadd.s32 4294967294, %s1962_s22   ;;  %s1962_s22 = sphi %s2006_s22, %s17_s22   ;;  %s1958_s21 = sphi %s2004_s21, %s2692_s21   ;;  %s1954_s20 = sphi %s2002_s20, %s2691_s20   ;;  %s1950_s19 = sphi %s2000_s19, %s2690_s19   ;;  %s1946_s18 = sphi %s1998_s18, %s2689_s18   ;;  %s1942_s17 = sphi %s1996_s17, %s2688_s17   ;;  %s1938_s16 = sphi %s1994_s16, %s2687_s16   ;;  %s1934_s15 = sphi %s1992_s15, %s2686_s15  }
   0x6   : > { %s26_s25 = sadd.s32 1, %s1954_s20  ;;  %s29_s26 = sadd.s32 1, %s1958_s21 }
   0x7   : > { %p27_p0 = scmp.ge.s32.totalorder %s26_s25, 2  ;;  %p137_p1 = scmp.ne.s32.totalorder %s1942_s17, %s1938_s16 }
   0x8   : > { %p138_p2 = scmp.eq.s32.totalorder %s1567_s23, 3  ;;  %p143_p5 = scmp.ne.s32.totalorder %s1938_s16, %s1934_s15 }
   0x9   : > { %s2694_s25 = smov (%p27_p0, %s26_s25), 0  ;;  %s2696_s26 = smov (!%p27_p0, %s29_s26), %s1958_s21 }
   0xa   : > { %s123_s27 = ssub.s32 %s1954_s20, %s2694_s25  ;;  %p2043_p3 = por %p138_p2, %p137_p1 }
   0xb   : > { %p31_p4 = scmp.ge.s32.totalorder %s2696_s26, 2  ;;  %p144_p6 = scmp.eq.s32.totalorder %s1568_s24, 3 }
   0xc   : > { %p1571_p7 = scmp.ge.s32.totalorder %s1962_s22, 1  ;;  %p179_p9 = scmp.lt.s32.totalorder %s1962_s22, 5 }
   0xd   : > { %s2698_s26 = smov (%p31_p4, %s2696_s26), 0  ;;  %p2052_p8 = por %p144_p6, %p143_p5 }
   0xe   : > { %s122_s30 = ssub.s32 %s1958_s21, %s2698_s26  ;;  %s127_s5 = sadd.s32 1, %s1942_s17 }
   0xf   : > { %s124_s6 = sor.u32 %s123_s27, %s122_s30  ;;  %p180_p10 = pnand %p1571_p7, %p179_p9 }
  0x10   : > { %p125_p11 = scmp.eq.s32.totalorder %s124_s6, 0  ;;  %p205_p12 = scmp.lt.s32.totalorder (!%p180_p10), %s1950_s19, 1 }
  0x11   : > { %183 = sbr.rel (%p180_p10) target bundleno = 415 (0x19f), region = 36  ;;  %s1658_s27 = sshll.u32 (!%p180_p10), %s1950_s19, 5 }
  0x12   : > { %s2061_s7 = scalar_select %p125_p11, %s1942_s17, %s127_s5  }
  0x13   : > { %s1662_s13 = smul.u32 (!%p180_p10), 96, %s1946_s18 }
  0x16   : > { %v1861_v0 = vld [vmem:[%s2681_s2 + $0x38] sm:$0xff]   ;;  %v250_v1 = vlaneseq  ;;  %v1862_v2 = vld [vmem:[%s2681_s2 + $0x30] sm:$0xff]   ;;  %s206_s12 = scalar_select %p205_p12, %s1950_s19, 1  ;;  %v1863_v4 = vld [vmem:[%s2681_s2 + $0x28] sm:$0xff]   ;;  %vm338_vm0 = vcmask 1046528   ;;  %vm479_vm1 = vcmask 1045504  }
  0x17   : > { %1739 = vmatprep.subr.bf16.mxu0 %v1861_v0  ;;  %1771 = vmatprep.subr.bf16.mxu1 %v1861_v0  ;;  %v1864_v7 = vld [vmem:[%s2681_s2 + $0x20] sm:$0xff]   ;;  %v1865_v27 = vld [vmem:[%s2681_s2 + $0x18] sm:$0xff]   ;;  %v1866_v46 = vld [vmem:[%s2681_s2 + $0x10] sm:$0xff]  }
  0x18   : > { %1740 = vmatpush3.bf16.msra.mxu0 %v1861_v0  ;;  %1779 = vmatpush3.bf16.msra.mxu1 %v1861_v0  ;;  %v2072_v3 = vshrl.u32 %v250_v1, 7  ;;  %s1787_s24 = smul.u32 216, %s206_s12  ;;  %v2090_v8 = vld [vmem:[%s2680_s1] sm:$0xff]  ;;  %v1867_v0 = vld [vmem:[%s2681_s2 + $0x8] sm:$0xff]   ;;  %s1964_s12 = smov [#allocation2]  }
  0x19   : > { %1741 = vmatprep.subr.bf16.mxu0 %v1862_v2  ;;  %1772 = vmatprep.subr.bf16.mxu1 %v1862_v2 }
  0x1a   : > { %v252_v5 = vsub.s32 0, %v2072_v3  ;;  %s209_s5 = scalar_lea.vmem %s2679_s0, %s1787_s24  ;;  %v288_v6 = vsub.s32 1, %v2072_v3  ;;  %v429_v10 = vsub.s32 2, %v2072_v3  ;;  %v590_v31 = vsub.s32 3, %v2072_v3  ;;  %s1663_s24 = sshll.u32 %s1946_s18, 4 }
  0x1b   : > { %s2082_s6 = scalar_lea.vmem %s209_s5, %s1662_s13  ;;  %v642_v43 = vsub.s32 4, %v2072_v3  ;;  %v782_v50 = vsub.s32 5, %v2072_v3  ;;  %v942_v63 = vsub.s32 6, %v2072_v3  ;;  %s1478_s30 = sadd.s32 %s1663_s24, %s1658_s27 }
  0x1c   : > { %1742 = vmatpush3.bf16.msra.mxu0 %v1862_v2  ;;  %1780 = vmatpush3.bf16.msra.mxu1 %v1862_v2  ;;  %v1665_v9 = vld [vmem:[%s2082_s6] sm:$0xff]   ;;  %v2095_v13 = vrot.slane %v2090_v8, %v252_v5  ;;  %v270_v14 = vld [vmem:[%s2082_s6 + $0x8] sm:$0x1]  ;;  %v2099_v15 = vrot.slane %v2090_v8, %v288_v6  ;;  %v1579_v17 = vld [vmem:[%s2082_s6 + $0xc] sm:$0xff]   ;;  %v2104_v20 = vrot.slane %v2090_v8, %v429_v10  ;;  %s1659_s5 = sshll.u32 %s1478_s30, 7  ;;  %s1874_s13 = sshll.u32 %s1964_s12, 4  ;;  %s1875_s13 = int_to_ptr.vmem [resolvable:$false] %s1874_s13 }
  0x1d   : > { %1743 = vmatprep.subr.bf16.mxu0 %v1863_v4  ;;  %1773 = vmatprep.subr.bf16.mxu1 %v1863_v4  ;;  %v1666_v11 = vunpack.c.l.bf16 %v1665_v9  ;;  %v1667_v12 = vunpack.c.h.bf16 %v1665_v9  ;;  %v411_v16 = vld [vmem:[%s2082_s6] sm:$0xe]  ;;  %v278_v18 = vunpack.c.l.bf16 %v270_v14  ;;  %v572_v21 = vunpack.c.l.bf16 %v1579_v17  ;;  %v2107_v22 = vld [vmem:[%s2082_s6 + $0x14] sm:$0x1]  ;;  %v1603_v32 = vld [vmem:[%s2082_s6 + $0xc] sm:$0xe]  ;;  %s2620_s9 = scalar_lea.hbm %s2683_s4, %s1659_s5 }
  0x1e   : > { %v419_v19 = vunpack.c.l.bf16 %v411_v16  ;;  %v573_v26 = vunpack.c.h.bf16 %v1579_v17  ;;  %v632_v36 = vunpack.c.l.bf16 %v2107_v22  ;;  %v2124_v40 = vrot.slane %v2090_v8, %v590_v31  ;;  %v1719_v45 = vld [vmem:[%s2082_s6 + $0x18] sm:$0xff]   ;;  %v2138_v55 = vld [vmem:[%s2082_s6 + $0x20] sm:$0x1] }
  0x1f   : > { %v254_v23 = vmul.f32 %v1666_v11, %v2095_v13  ;;  %v255_v24 = vmul.f32 %v1667_v12, %v2095_v13  ;;  %v290_v25 = vmul.f32 %v1666_v11, %v2099_v15  ;;  %v291_v28 = vmul.f32 %v1667_v12, %v2099_v15  ;;  %v1637_v11 = vld [vmem:[%s2082_s6 + $0x18] sm:$0xe] }
  0x20   : > { %1744 = vmatpush3.bf16.msra.mxu0 %v1863_v4  ;;  %1781 = vmatpush3.bf16.msra.mxu1 %v1863_v4  ;;  %v292_v29 = vmul.f32 %v2099_v15, %v278_v18  ;;  %v431_v30 = vmul.f32 %v2104_v20, %v419_v19  ;;  %v432_v34 = vmul.f32 %v1667_v12, %v2104_v20  ;;  %v772_v44 = vunpack.c.l.bf16 %v1603_v32 }
  0x21   : > { %1745 = vmatprep.subr.bf16.mxu0 %v1864_v7  ;;  %1774 = vmatprep.subr.bf16.mxu1 %v1864_v7  ;;  %v339_v33 = vrot.slane %v290_v25, 1  ;;  %v433_v35 = vmul.f32 %v2104_v20, %v278_v18  ;;  %v340_v37 = vrot.slane %v291_v28, 1  ;;  %v592_v49 = vmul.f32 %v2124_v40, %v572_v21  ;;  %v2166_v18 = vld [vmem:[%s2680_s1 + $0x8] ss:$0 sm:$0xff] }
  0x22   : > { %v342_v38 = vrot.slane %v292_v29, 1  ;;  %v480_v39 = vrot.slane %v431_v30, 2  ;;  %v481_v41 = vrot.slane %v432_v34, 2  ;;  %v593_v56 = vmul.f32 %v2124_v40, %v573_v26  ;;  %v1713_v29 = vld [vmem:[%s2082_s6 + $0x30] sm:$0xff]  }
  0x23   : > { %v483_v42 = vrot.slane %v433_v35, 2  ;;  %v341_v47 = vsel %vm338_vm0, %v339_v33, %v340_v37  ;;  %v2142_v57 = vrot.slane %v2090_v8, %v642_v43  ;;  %v2145_v58 = vrot.slane %v2090_v8, %v782_v50 }
  0x24   : > { %1746 = vmatpush3.bf16.msra.mxu0 %v1864_v7  ;;  %1782 = vmatpush3.bf16.msra.mxu1 %v1864_v7  ;;  %v343_v48 = vsel %vm338_vm0, %v340_v37, %v342_v38  ;;  %v395_v51 = vadd.f32 %v341_v47, %v254_v23  ;;  %v482_v53 = vsel %vm479_vm1, %v480_v39, %v481_v41  ;;  %v2147_v59 = vunpack.c.l.bf16 %v1719_v45 }
  0x25   : > { %1747 = vmatprep.subr.bf16.mxu0 %v1865_v27  ;;  %1775 = vmatprep.subr.bf16.mxu1 %v1865_v27  ;;  %v396_v52 = vadd.f32 %v343_v48, %v255_v24  ;;  %v484_v54 = vsel %vm479_vm1, %v481_v41, %v483_v42  ;;  %v2149_v62 = vunpack.c.h.bf16 %v1719_v45  ;;  %v644_v1 = vmul.f32 %v2142_v57, %v572_v21  ;;  %v1868_v24 = vld [vmem:[%s2681_s2] sm:$0xff]   ;;  %v274_v45 = vld [vmem:[%s2082_s6 + $0x38] sm:$0x1] }
  0x26   : > { %v536_v60 = vadd.f32 %v482_v53, %v395_v51  ;;  %v645_v2 = vmul.f32 %v2142_v57, %v573_v26  ;;  %v646_v4 = vmul.f32 %v2142_v57, %v632_v36  ;;  %v984_v5 = vunpack.c.l.bf16 %v2138_v55 }
  0x27   : > { %v537_v61 = vadd.f32 %v484_v54, %v396_v52  ;;  %v784_v9 = vmul.f32 %v2145_v58, %v772_v44  ;;  %v785_v10 = vmul.f32 %v2145_v58, %v573_v26  ;;  %v692_v12 = vrot.slane %v644_v1, 1 }
  0x28   : > { %1748 = vmatpush3.bf16.msra.mxu0 %v1865_v27  ;;  %1783 = vmatpush3.bf16.msra.mxu1 %v1865_v27  ;;  %v608_v6 = vadd.f32 %v592_v49, %v536_v60  ;;  %v693_v14 = vrot.slane %v645_v2, 1  ;;  %v695_v16 = vrot.slane %v646_v4, 1  ;;  %v786_v17 = vmul.f32 %v2145_v58, %v632_v36 }
  0x29   : > { %1749 = vmatprep.subr.bf16.mxu0 %v1866_v46  ;;  %1776 = vmatprep.subr.bf16.mxu1 %v1866_v46  ;;  %v609_v7 = vadd.f32 %v593_v56, %v537_v61  ;;  %v832_v19 = vrot.slane %v784_v9, 2  ;;  %v833_v21 = vrot.slane %v785_v10, 2  ;;  %v2169_v22 = vrot.slane %v2090_v8, %v942_v63  ;;  %v415_v61 = vld [vmem:[%s2082_s6 + $0x30] sm:$0xe]  ;;  %v1587_v9 = vld [vmem:[%s2082_s6 + $0x3c] sm:$0xff]  }
  0x2a   : > { %v994_v23 = vsub.s32 7, %v2072_v3  ;;  %v694_v25 = vsel %vm338_vm0, %v692_v12, %v693_v14  ;;  %v696_v26 = vsel %vm338_vm0, %v693_v14, %v695_v16  ;;  %v835_v27 = vrot.slane %v786_v17, 2 }
  0x2b   : > { %v1124_v28 = vunpack.c.l.bf16 %v1637_v11  ;;  %v748_v30 = vadd.f32 %v694_v25, %v608_v6  ;;  %v749_v31 = vadd.f32 %v696_v26, %v609_v7  ;;  %v834_v32 = vsel %vm479_vm1, %v832_v19, %v833_v21 }
  0x2c   : > { %1750 = vmatpush3.bf16.msra.mxu0 %v1866_v46  ;;  %1784 = vmatpush3.bf16.msra.mxu1 %v1866_v46  ;;  %v944_v3 = vmul.f32 %v2147_v59, %v2169_v22  ;;  %v836_v33 = vsel %vm479_vm1, %v833_v21, %v835_v27  ;;  %v945_v34 = vmul.f32 %v2149_v62, %v2169_v22  ;;  %v2190_v41 = vunpack.c.l.bf16 %v1713_v29  ;;  %v1599_v27 = vld [vmem:[%s2082_s6 + $0x44] sm:$0x1] }
  0x2d   : > { %1751 = vmatprep.subr.bf16.mxu0 %v1867_v0  ;;  %1777 = vmatprep.subr.bf16.mxu1 %v1867_v0  ;;  %v2185_v35 = vrot.slane %v2090_v8, %v994_v23  ;;  %v1136_v36 = vmul.f32 %v2166_v18, %v1124_v28  ;;  %v888_v37 = vadd.f32 %v834_v32, %v748_v30  ;;  %v2199_v53 = vunpack.c.h.bf16 %v1713_v29  ;;  %v1607_v32 = vld [vmem:[%s2082_s6 + $0x3c] sm:$0xe] }
  0x2e   : > { %v889_v38 = vadd.f32 %v836_v33, %v749_v31  ;;  %v1137_v39 = vmul.f32 %v2149_v62, %v2166_v18  ;;  %v1138_v48 = vmul.f32 %v2166_v18, %v984_v5  ;;  %v262_v56 = vmul.f32 %v2190_v41, %v2095_v13 }
  0x2f   : > { %v996_v42 = vmul.f32 %v2147_v59, %v2185_v35  ;;  %v997_v8 = vmul.f32 %v2149_v62, %v2185_v35  ;;  %v998_v43 = vmul.f32 %v2185_v35, %v984_v5  ;;  %v1184_v44 = vrot.slane %v1136_v36, 2 }
  0x30   : > { %1752 = vmatpush3.bf16.msra.mxu0 %v1867_v0  ;;  %1785 = vmatpush3.bf16.msra.mxu1 %v1867_v0  ;;  %v960_v46 = vadd.f32 %v944_v3, %v888_v37  ;;  %v961_v47 = vadd.f32 %v945_v34, %v889_v38  ;;  %v1185_v49 = vrot.slane %v1137_v39, 2  ;;  %v1187_v55 = vrot.slane %v1138_v48, 2 }
  0x31   : > { %1753 = vmatprep.subr.bf16.mxu0 %v1868_v24  ;;  %1778 = vmatprep.subr.bf16.mxu1 %v1868_v24  ;;  %v1044_v50 = vrot.slane %v996_v42, 1  ;;  %v1045_v51 = vrot.slane %v997_v8, 1  ;;  %v1047_v52 = vrot.slane %v998_v43, 1  ;;  %v282_v60 = vunpack.c.l.bf16 %v274_v45 }
  0x32   : > { %v1186_v54 = vsel %vm479_vm1, %v1184_v44, %v1185_v49  ;;  %v263_v1 = vmul.f32 %v2199_v53, %v2095_v13  ;;  %v302_v2 = vmul.f32 %v2190_v41, %v2099_v15  ;;  %v1188_v6 = vsel %vm479_vm1, %v1185_v49, %v1187_v55 }
  0x33   : > { %v1046_v63 = vsel %vm338_vm0, %v1044_v50, %v1045_v51  ;;  %v1048_v0 = vsel %vm338_vm0, %v1045_v51, %v1047_v52  ;;  %v303_v7 = vmul.f32 %v2199_v53, %v2099_v15  ;;  %v304_v10 = vmul.f32 %v2099_v15, %v282_v60  ;;  %v1721_v50 = vld [vmem:[%s2082_s6 + $0x48] sm:$0xff]  }
  0x34   : > { %1754 = vmatpush3.bf16.msra.mxu0 %v1868_v24  ;;  %1786 = vmatpush3.bf16.msra.mxu1 %v1868_v24  ;;  %v1100_v4 = vadd.f32 %v1046_v63, %v960_v46  ;;  %v1101_v5 = vadd.f32 %v1048_v0, %v961_v47  ;;  %v359_v11 = vrot.slane %v302_v2, 1  ;;  %v423_v12 = vunpack.c.l.bf16 %v415_v61 }
  0x35   : > { %v444_v14 = vmul.f32 %v2199_v53, %v2104_v20  ;;  %v360_v19 = vrot.slane %v303_v7, 1  ;;  %v445_v21 = vmul.f32 %v2104_v20, %v282_v60  ;;  %v362_v23 = vrot.slane %v304_v10, 1 }
  0x36   : > { %v1240_v16 = vadd.f32 %v1186_v54, %v1100_v4  ;;  %v1241_v17 = vadd.f32 %v1188_v6, %v1101_v5  ;;  %v443_v24 = vmul.f32 %v2104_v20, %v423_v12  ;;  %v580_v26 = vunpack.c.l.bf16 %v1587_v9 }
  0x37   : > { %v501_v25 = vrot.slane %v444_v14, 2  ;;  %v361_v29 = vsel %vm338_vm0, %v359_v11, %v360_v19  ;;  %v503_v30 = vrot.slane %v445_v21, 2  ;;  %v581_v31 = vunpack.c.h.bf16 %v1587_v9  ;;  %v1641_v11 = vld [vmem:[%s2082_s6 + $0x48] sm:$0xe] }
  0x38   : > { %v1256_v28 = vpack.c.bf16 %v1241_v17, %v1240_v16  ;;  %v363_v3 = vsel %vm338_vm0, %v360_v19, %v362_v23  ;;  %v403_v33 = vadd.f32 %v361_v29, %v262_v56  ;;  %v500_v34 = vrot.slane %v443_v24, 2  ;;  %v1633_v56 = vld [vmem:[%s2082_s6 + $0x50] sm:$0x1] }
  0x39   : > { %v600_v36 = vmul.f32 %v2124_v40, %v580_v26  ;;  %v404_v37 = vadd.f32 %v363_v3, %v263_v1  ;;  %v504_v38 = vsel %vm479_vm1, %v501_v25, %v503_v30  ;;  %v601_v39 = vmul.f32 %v2124_v40, %v581_v31  ;;  %v220_v29 = vld [vmem:[%s2082_s6 + $0xc] sm:$0xff]  }
  0x3a   : > { %1755 = vmatprep.mubr.bf16.mxu0 %v1256_v28  ;;  %v636_v42 = vunpack.c.l.bf16 %v1599_v27  ;;  %v502_v8 = vsel %vm479_vm1, %v500_v34, %v501_v25  ;;  %v656_v43 = vmul.f32 %v2142_v57, %v580_v26  ;;  %v657_v44 = vmul.f32 %v2142_v57, %v581_v31 }
  0x3b   : > { %v776_v45 = vunpack.c.l.bf16 %v1607_v32  ;;  %v544_v46 = vadd.f32 %v502_v8, %v403_v33  ;;  %v545_v47 = vadd.f32 %v504_v38, %v404_v37  ;;  %v797_v49 = vmul.f32 %v2145_v58, %v581_v31  ;;  %v271_v33 = vld [vmem:[%s2082_s6 + $0x14] sm:$0x1] }
  0x3c   : > { %v658_v48 = vmul.f32 %v2142_v57, %v636_v42  ;;  %v712_v51 = vrot.slane %v656_v43, 1  ;;  %v713_v52 = vrot.slane %v657_v44, 1  ;;  %v798_v55 = vmul.f32 %v2145_v58, %v636_v42 }
  0x3d   : > { %v796_v54 = vmul.f32 %v2145_v58, %v776_v45  ;;  %v616_v60 = vadd.f32 %v600_v36, %v544_v46  ;;  %v617_v61 = vadd.f32 %v601_v39, %v545_v47  ;;  %v853_v0 = vrot.slane %v797_v49, 2 }
  0x3e   : > { %v715_v63 = vrot.slane %v658_v48, 1  ;;  %v714_v1 = vsel %vm338_vm0, %v712_v51, %v713_v52  ;;  %v855_v4 = vrot.slane %v798_v55, 2  ;;  %v2237_v5 = vunpack.c.l.bf16 %v1721_v50  ;;  %v412_v48 = vld [vmem:[%s2082_s6 + $0xc] sm:$0xe] }
  0x3f   : > { %v852_v2 = vrot.slane %v796_v54, 2  ;;  %v756_v7 = vadd.f32 %v714_v1, %v616_v60  ;;  %v2240_v9 = vunpack.c.h.bf16 %v1721_v50  ;;  %v988_v10 = vunpack.c.l.bf16 %v1633_v56 }
  0x40   : > { %v716_v6 = vsel %vm338_vm0, %v713_v52, %v715_v63  ;;  %v856_v16 = vsel %vm479_vm1, %v853_v0, %v855_v4  ;;  %v952_v17 = vmul.f32 %v2237_v5, %v2169_v22  ;;  %v1008_v23 = vmul.f32 %v2237_v5, %v2185_v35 }
  0x41   : > { %v757_v12 = vadd.f32 %v716_v6, %v617_v61  ;;  %v854_v14 = vsel %vm479_vm1, %v852_v2, %v853_v0  ;;  %v953_v21 = vmul.f32 %v2240_v9, %v2169_v22  ;;  %v1009_v24 = vmul.f32 %v2240_v9, %v2185_v35 }
  0x42   : > { %v896_v19 = vadd.f32 %v854_v14, %v756_v7  ;;  %v1010_v26 = vmul.f32 %v2185_v35, %v988_v10  ;;  %v1128_v27 = vunpack.c.l.bf16 %v1641_v11  ;;  %v1149_v28 = vmul.f32 %v2240_v9, %v2166_v18 }
  0x43   : > { %v897_v25 = vadd.f32 %v856_v16, %v757_v12  ;;  %v1064_v31 = vrot.slane %v1008_v23, 1  ;;  %v1065_v32 = vrot.slane %v1009_v24, 1  ;;  %v1150_v3 = vmul.f32 %v2166_v18, %v988_v10  ;;  %v1596_v10 = vld [vmem:[%s2082_s6 + $0x20] sm:$0x1] }
  0x44   : > { %v968_v30 = vadd.f32 %v952_v17, %v896_v19  ;;  %v1067_v36 = vrot.slane %v1010_v26, 1  ;;  %v1148_v37 = vmul.f32 %v2166_v18, %v1128_v27  ;;  %v1205_v38 = vrot.slane %v1149_v28, 2  ;;  %v1604_v17 = vld [vmem:[%s2082_s6 + $0x18] sm:$0xe] }
  0x45   : > { %v969_v34 = vadd.f32 %v953_v21, %v897_v25  ;;  %v1066_v39 = vsel %vm338_vm0, %v1064_v31, %v1065_v32  ;;  %v1207_v42 = vrot.slane %v1150_v3, 2  ;;  %v236_v8 = vunpack.c.l.bf16 %v220_v29 }
  0x46   : > { %v237_v43 = vunpack.c.h.bf16 %v220_v29  ;;  %v1068_v44 = vsel %vm338_vm0, %v1065_v32, %v1067_v36  ;;  %v1108_v45 = vadd.f32 %v1066_v39, %v968_v30  ;;  %v1204_v46 = vrot.slane %v1148_v37, 2  ;;  %v1615_v37 = vld [vmem:[%s2082_s6 + $0x24] sm:$0xff]  }
  0x47   : > { %v279_v47 = vunpack.c.l.bf16 %v271_v33  ;;  %v1109_v49 = vadd.f32 %v1068_v44, %v969_v34  ;;  %v1208_v50 = vsel %vm479_vm1, %v1205_v38, %v1207_v42  ;;  %v256_v51 = vmul.f32 %v2095_v13, %v236_v8 }
  0x48   : > { %v257_v52 = vmul.f32 %v2095_v13, %v237_v43  ;;  %v1206_v54 = vsel %vm479_vm1, %v1204_v46, %v1205_v38  ;;  %v293_v55 = vmul.f32 %v2099_v15, %v236_v8  ;;  %v294_v56 = vmul.f32 %v2099_v15, %v237_v43 }
  0x49   : > { %v295_v60 = vmul.f32 %v2099_v15, %v279_v47  ;;  %v1248_v61 = vadd.f32 %v1206_v54, %v1108_v45  ;;  %v1249_v63 = vadd.f32 %v1208_v50, %v1109_v49  ;;  %v420_v0 = vunpack.c.l.bf16 %v412_v48 }
  0x4a   : > { %v435_v1 = vmul.f32 %v2104_v20, %v237_v43  ;;  %v344_v2 = vrot.slane %v293_v55, 1  ;;  %v345_v4 = vrot.slane %v294_v56, 1  ;;  %v436_v7 = vmul.f32 %v2104_v20, %v279_v47  ;;  %v1630_v43 = vld [vmem:[%s2082_s6 + $0x2c] sm:$0x1] }
  0x4b   : > { %v347_v6 = vrot.slane %v295_v60, 1  ;;  %v1260_v11 = vpack.c.bf16 %v1249_v63, %v1248_v61  ;;  %v434_v12 = vmul.f32 %v2104_v20, %v420_v0  ;;  %v594_v16 = vmul.f32 %v2147_v59, %v2124_v40  ;;  %v1638_v60 = vld [vmem:[%s2082_s6 + $0x24] sm:$0xe] }
  0x4c   : > { %v486_v14 = vrot.slane %v435_v1, 2  ;;  %v346_v19 = vsel %vm338_vm0, %v344_v2, %v345_v4  ;;  %v488_v23 = vrot.slane %v436_v7, 2  ;;  %v595_v24 = vmul.f32 %v2149_v62, %v2124_v40 }
  0x4d   : > { %v348_v21 = vsel %vm338_vm0, %v345_v4, %v347_v6  ;;  %1763 = vmatprep.mubr.bf16.mxu1 %v1260_v11  ;;  %v397_v25 = vadd.f32 %v346_v19, %v256_v51  ;;  %v485_v27 = vrot.slane %v434_v12, 2  ;;  %v633_v28 = vunpack.c.l.bf16 %v1596_v10 }
  0x4e   : > { %v398_v26 = vadd.f32 %v348_v21, %v257_v52  ;;  %v489_v29 = vsel %vm479_vm1, %v486_v14, %v488_v23  ;;  %v647_v30 = vmul.f32 %v2147_v59, %v2142_v57  ;;  %v648_v31 = vmul.f32 %v2149_v62, %v2142_v57 }
  0x4f   : > { %v773_v32 = vunpack.c.l.bf16 %v1604_v17  ;;  %v487_v3 = vsel %vm479_vm1, %v485_v27, %v486_v14  ;;  %v649_v34 = vmul.f32 %v2142_v57, %v633_v28  ;;  %v788_v36 = vmul.f32 %v2149_v62, %v2145_v58 }
  0x50   : > { %v539_v33 = vadd.f32 %v489_v29, %v398_v26  ;;  %v538_v38 = vadd.f32 %v487_v3, %v397_v25  ;;  %v697_v39 = vrot.slane %v647_v30, 1  ;;  %v698_v42 = vrot.slane %v648_v31, 1 }
  0x51   : > { %v787_v8 = vmul.f32 %v2145_v58, %v773_v32  ;;  %v700_v45 = vrot.slane %v649_v34, 1  ;;  %v789_v46 = vmul.f32 %v2145_v58, %v633_v28  ;;  %v838_v47 = vrot.slane %v788_v36, 2  ;;  %v275_v28 = vld [vmem:[%s2082_s6 + $0x44] sm:$0x1] }
  0x52   : > { %v611_v44 = vadd.f32 %v595_v24, %v539_v33  ;;  %v610_v48 = vadd.f32 %v594_v16, %v538_v38  ;;  %v699_v49 = vsel %vm338_vm0, %v697_v39, %v698_v42  ;;  %v926_v51 = vunpack.c.l.bf16 %v1615_v37  ;;  %v228_v16 = vld [vmem:[%s2082_s6 + $0x3c] sm:$0xff]  }
  0x53   : > { %v837_v50 = vrot.slane %v787_v8, 2  ;;  %v701_v52 = vsel %vm338_vm0, %v698_v42, %v700_v45  ;;  %v840_v54 = vrot.slane %v789_v46, 2  ;;  %v927_v55 = vunpack.c.h.bf16 %v1615_v37  ;;  %v416_v37 = vld [vmem:[%s2082_s6 + $0x3c] sm:$0xe] }
  0x54   : > { %v985_v56 = vunpack.c.l.bf16 %v1630_v43  ;;  %v750_v61 = vadd.f32 %v699_v49, %v610_v48  ;;  %v751_v63 = vadd.f32 %v701_v52, %v611_v44  ;;  %v946_v1 = vmul.f32 %v2169_v22, %v926_v51 }
  0x55   : > { %v839_v0 = vsel %vm479_vm1, %v837_v50, %v838_v47  ;;  %v841_v2 = vsel %vm479_vm1, %v838_v47, %v840_v54  ;;  %v947_v4 = vmul.f32 %v2169_v22, %v927_v55  ;;  %v999_v6 = vmul.f32 %v2185_v35, %v926_v51 }
  0x56   : > { %v1000_v7 = vmul.f32 %v2185_v35, %v927_v55  ;;  %v890_v10 = vadd.f32 %v839_v0, %v750_v61  ;;  %v891_v11 = vadd.f32 %v841_v2, %v751_v63  ;;  %v1001_v12 = vmul.f32 %v2185_v35, %v985_v56 }
  0x57   : > { %v1125_v14 = vunpack.c.l.bf16 %v1638_v60  ;;  %v1049_v17 = vrot.slane %v999_v6, 1  ;;  %v1140_v21 = vmul.f32 %v2166_v18, %v927_v55  ;;  %v1141_v23 = vmul.f32 %v2166_v18, %v985_v56  ;;  %v1600_v56 = vld [vmem:[%s2082_s6 + $0x50] sm:$0x1] }
  0x58   : > { %v1050_v19 = vrot.slane %v1000_v7, 1  ;;  %v962_v24 = vadd.f32 %v946_v1, %v890_v10  ;;  %v963_v25 = vadd.f32 %v947_v4, %v891_v11  ;;  %v1052_v26 = vrot.slane %v1001_v12, 1  ;;  %v1608_v7 = vld [vmem:[%s2082_s6 + $0x48] sm:$0xe] }
  0x59   : > { %v1139_v27 = vmul.f32 %v2166_v18, %v1125_v14  ;;  %v1190_v30 = vrot.slane %v1140_v21, 2  ;;  %v1192_v31 = vrot.slane %v1141_v23, 2  ;;  %v244_v32 = vunpack.c.l.bf16 %v228_v16 }
  0x5a   : > { %v1051_v29 = vsel %vm338_vm0, %v1049_v17, %v1050_v19  ;;  %v1053_v3 = vsel %vm338_vm0, %v1050_v19, %v1052_v26  ;;  %v245_v36 = vunpack.c.h.bf16 %v228_v16  ;;  %v283_v8 = vunpack.c.l.bf16 %v275_v28 }
  0x5b   : > { %v1102_v33 = vadd.f32 %v1051_v29, %v962_v24  ;;  %v1189_v34 = vrot.slane %v1139_v27, 2  ;;  %v1103_v38 = vadd.f32 %v1053_v3, %v963_v25  ;;  %v1193_v39 = vsel %vm479_vm1, %v1190_v30, %v1192_v31  ;;  %v1623_v27 = vld [vmem:[%s2082_s6 + $0x54] sm:$0xff]  }
  0x5c   : > { %v264_v42 = vmul.f32 %v2095_v13, %v244_v32  ;;  %v265_v44 = vmul.f32 %v2095_v13, %v245_v36  ;;  %v305_v45 = vmul.f32 %v2099_v15, %v244_v32  ;;  %v306_v46 = vmul.f32 %v2099_v15, %v245_v36 }
  0x5d   : > { %v1191_v43 = vsel %vm479_vm1, %v1189_v34, %v1190_v30  ;;  %v1243_v48 = vadd.f32 %v1193_v39, %v1103_v38  ;;  %v307_v49 = vmul.f32 %v2099_v15, %v283_v8  ;;  %v424_v50 = vunpack.c.l.bf16 %v416_v37 }
  0x5e   : > { %v1242_v47 = vadd.f32 %v1191_v43, %v1102_v33  ;;  %v364_v51 = vrot.slane %v305_v45, 1  ;;  %v365_v52 = vrot.slane %v306_v46, 1  ;;  %v447_v54 = vmul.f32 %v2104_v20, %v245_v36  ;;  %v1634_v36 = vld [vmem:[%s2082_s6 + $0x5c] sm:$0x1] }
  0x5f   : > { %v448_v55 = vmul.f32 %v2104_v20, %v283_v8  ;;  %v367_v61 = vrot.slane %v307_v49, 1  ;;  %v446_v63 = vmul.f32 %v2104_v20, %v424_v50  ;;  %v602_v0 = vmul.f32 %v2237_v5, %v2124_v40  ;;  %v1642_v50 = vld [vmem:[%s2082_s6 + $0x54] sm:$0xe] }
  0x60   : > { %v1257_v60 = vpack.c.bf16 %v1243_v48, %v1242_v47  ;;  %v366_v1 = vsel %vm338_vm0, %v364_v51, %v365_v52  ;;  %v506_v2 = vrot.slane %v447_v54, 2  ;;  %v603_v6 = vmul.f32 %v2240_v9, %v2124_v40 }
  0x61   : > { %v508_v4 = vrot.slane %v448_v55, 2  ;;  %v368_v10 = vsel %vm338_vm0, %v365_v52, %v367_v61  ;;  %v405_v11 = vadd.f32 %v366_v1, %v264_v42  ;;  %v505_v12 = vrot.slane %v446_v63, 2 }
  0x62   : > { %1756 = vmatmul.mubr.bf16.vlgmr.msra.gmra.mxu0 %v1257_v60  ;;  %v637_v14 = vunpack.c.l.bf16 %v1600_v56  ;;  %v406_v16 = vadd.f32 %v368_v10, %v265_v44  ;;  %v659_v19 = vmul.f32 %v2237_v5, %v2142_v57  ;;  %v660_v21 = vmul.f32 %v2240_v9, %v2142_v57 }
  0x63   : > { %v509_v17 = vsel %vm479_vm1, %v506_v2, %v508_v4  ;;  %v507_v23 = vsel %vm479_vm1, %v505_v12, %v506_v2  ;;  %v777_v25 = vunpack.c.l.bf16 %v1608_v7  ;;  %v800_v26 = vmul.f32 %v2240_v9, %v2145_v58 }
  0x64   : > { %v661_v24 = vmul.f32 %v2142_v57, %v637_v14  ;;  %v546_v28 = vadd.f32 %v507_v23, %v405_v11  ;;  %v547_v29 = vadd.f32 %v509_v17, %v406_v16  ;;  %v717_v30 = vrot.slane %v659_v19, 1 }
  0x65   : > { %v718_v31 = vrot.slane %v660_v21, 1  ;;  %v799_v3 = vmul.f32 %v2145_v58, %v777_v25  ;;  %v801_v33 = vmul.f32 %v2145_v58, %v637_v14  ;;  %v858_v34 = vrot.slane %v800_v26, 2  ;;  %v413_v21 = vld [vmem:[%s2082_s6 + $0x18] sm:$0xe] }
  0x66   : > { %v720_v32 = vrot.slane %v661_v24, 1  ;;  %v618_v37 = vadd.f32 %v602_v0, %v546_v28  ;;  %v619_v38 = vadd.f32 %v603_v6, %v547_v29  ;;  %v934_v42 = vunpack.c.l.bf16 %v1623_v27  ;;  %v272_v6 = vld [vmem:[%s2082_s6 + $0x20] sm:$0x1] }
  0x67   : > { %v719_v39 = vsel %vm338_vm0, %v717_v30, %v718_v31  ;;  %v857_v43 = vrot.slane %v799_v3, 2  ;;  %v860_v44 = vrot.slane %v801_v33, 2  ;;  %v935_v45 = vunpack.c.h.bf16 %v1623_v27 }
  0x68   : > { %v721_v8 = vsel %vm338_vm0, %v718_v31, %v720_v32  ;;  %v758_v46 = vadd.f32 %v719_v39, %v618_v37  ;;  %v954_v48 = vmul.f32 %v2169_v22, %v934_v42  ;;  %v989_v49 = vunpack.c.l.bf16 %v1634_v36 }
  0x69   : > { %v759_v47 = vadd.f32 %v721_v8, %v619_v38  ;;  %v859_v51 = vsel %vm479_vm1, %v857_v43, %v858_v34  ;;  %v861_v52 = vsel %vm479_vm1, %v858_v34, %v860_v44  ;;  %v955_v54 = vmul.f32 %v2169_v22, %v935_v45  ;;  %v1583_v34 = vld [vmem:[%s2082_s6 + $0x24] sm:$0xff]  }
  0x6a   : > { %v1011_v55 = vmul.f32 %v2185_v35, %v934_v42  ;;  %v898_v56 = vadd.f32 %v859_v51, %v758_v46  ;;  %v1012_v61 = vmul.f32 %v2185_v35, %v935_v45  ;;  %v1013_v63 = vmul.f32 %v2185_v35, %v989_v49 }
  0x6b   : > { %v899_v60 = vadd.f32 %v861_v52, %v759_v47  ;;  %v1129_v1 = vunpack.c.l.bf16 %v1642_v50  ;;  %v1152_v2 = vmul.f32 %v2166_v18, %v935_v45  ;;  %v1153_v4 = vmul.f32 %v2166_v18, %v989_v49 }
  0x6c   : > { %v1069_v0 = vrot.slane %v1011_v55, 1  ;;  %v970_v7 = vadd.f32 %v954_v48, %v898_v56  ;;  %v1070_v11 = vrot.slane %v1012_v61, 1  ;;  %v1072_v12 = vrot.slane %v1013_v63, 1  ;;  %v1597_v48 = vld [vmem:[%s2082_s6 + $0x2c] sm:$0x1] }
  0x6d   : > { %v971_v10 = vadd.f32 %v955_v54, %v899_v60  ;;  %v1151_v14 = vmul.f32 %v2166_v18, %v1129_v1  ;;  %v1210_v16 = vrot.slane %v1152_v2, 2  ;;  %v1212_v17 = vrot.slane %v1153_v4, 2  ;;  %v1605_v54 = vld [vmem:[%s2082_s6 + $0x24] sm:$0xe] }
  0x6e   : > { %v258_v19 = vmul.f32 %v2147_v59, %v2095_v13  ;;  %v1071_v23 = vsel %vm338_vm0, %v1069_v0, %v1070_v11  ;;  %v1073_v24 = vsel %vm338_vm0, %v1070_v11, %v1072_v12  ;;  %v259_v25 = vmul.f32 %v2149_v62, %v2095_v13 }
  0x6f   : > { %v280_v26 = vunpack.c.l.bf16 %v272_v6  ;;  %v1110_v27 = vadd.f32 %v1071_v23, %v970_v7  ;;  %v1111_v28 = vadd.f32 %v1073_v24, %v971_v10  ;;  %v1209_v29 = vrot.slane %v1151_v14, 2  ;;  %v1631_v23 = vld [vmem:[%s2082_s6 + $0x38] sm:$0x1] }
  0x70   : > { %v1213_v30 = vsel %vm479_vm1, %v1210_v16, %v1212_v17  ;;  %v296_v31 = vmul.f32 %v2147_v59, %v2099_v15  ;;  %v297_v32 = vmul.f32 %v2149_v62, %v2099_v15  ;;  %v421_v33 = vunpack.c.l.bf16 %v413_v21 }
  0x71   : > { %v298_v3 = vmul.f32 %v2099_v15, %v280_v26  ;;  %v1211_v36 = vsel %vm479_vm1, %v1209_v29, %v1210_v16  ;;  %v1251_v37 = vadd.f32 %v1213_v30, %v1111_v28  ;;  %v438_v38 = vmul.f32 %v2149_v62, %v2104_v20 }
  0x72   : > { %v439_v39 = vmul.f32 %v2104_v20, %v280_v26  ;;  %v1250_v42 = vadd.f32 %v1211_v36, %v1110_v27  ;;  %v349_v8 = vrot.slane %v296_v31, 1  ;;  %v350_v59 = vrot.slane %v297_v32, 1  ;;  %v1639_v32 = vld [vmem:[%s2082_s6 + $0x30] sm:$0xe] }
  0x73   : > { %v352_v43 = vrot.slane %v298_v3, 1  ;;  %v437_v44 = vmul.f32 %v2104_v20, %v421_v33  ;;  %v491_v45 = vrot.slane %v438_v38, 2  ;;  %v576_v47 = vunpack.c.l.bf16 %v1583_v34 }
  0x74   : > { %v493_v46 = vrot.slane %v439_v39, 2  ;;  %v1261_v49 = vpack.c.bf16 %v1251_v37, %v1250_v42  ;;  %v351_v50 = vsel %vm338_vm0, %v349_v8, %v350_v59  ;;  %v577_v52 = vunpack.c.h.bf16 %v1583_v34 }
  0x75   : > { %v353_v51 = vsel %vm338_vm0, %v350_v59, %v352_v43  ;;  %v399_v62 = vadd.f32 %v351_v50, %v258_v19  ;;  %v490_v56 = vrot.slane %v437_v44, 2  ;;  %v596_v61 = vmul.f32 %v2124_v40, %v576_v47 }
  0x76   : > { %v400_v55 = vadd.f32 %v353_v51, %v259_v25  ;;  %v494_v60 = vsel %vm479_vm1, %v491_v45, %v493_v46  ;;  %1764 = vmatmul.mubr.bf16.vlgmr.msra.gmra.mxu1 %v1261_v49  ;;  %v597_v63 = vmul.f32 %v2124_v40, %v577_v52  ;;  %v634_v0 = vunpack.c.l.bf16 %v1597_v48 }
  0x77   : > { %v650_v1 = vmul.f32 %v2142_v57, %v576_v47  ;;  %v492_v2 = vsel %vm479_vm1, %v490_v56, %v491_v45  ;;  %v651_v6 = vmul.f32 %v2142_v57, %v577_v52  ;;  %v774_v7 = vunpack.c.l.bf16 %v1605_v54  ;;  %v276_v54 = vld [vmem:[%s2082_s6 + $0x50] sm:$0x1] }
  0x78   : > { %v541_v4 = vadd.f32 %v494_v60, %v400_v55  ;;  %v540_v10 = vadd.f32 %v492_v2, %v399_v62  ;;  %v652_v11 = vmul.f32 %v2142_v57, %v634_v0  ;;  %v791_v14 = vmul.f32 %v2145_v58, %v577_v52 }
  0x79   : > { %v702_v12 = vrot.slane %v650_v1, 1  ;;  %v703_v17 = vrot.slane %v651_v6, 1  ;;  %v790_v19 = vmul.f32 %v2145_v58, %v774_v7  ;;  %v792_v21 = vmul.f32 %v2145_v58, %v634_v0 }
  0x7a   : > { %v613_v16 = vadd.f32 %v597_v63, %v541_v4  ;;  %v612_v24 = vadd.f32 %v596_v61, %v540_v10  ;;  %v705_v25 = vrot.slane %v652_v11, 1  ;;  %v843_v26 = vrot.slane %v791_v14, 2  ;;  %v417_v61 = vld [vmem:[%s2082_s6 + $0x48] sm:$0xe] }
  0x7b   : > { %v948_v27 = vmul.f32 %v2190_v41, %v2169_v22  ;;  %v704_v28 = vsel %vm338_vm0, %v702_v12, %v703_v17  ;;  %v842_v29 = vrot.slane %v790_v19, 2  ;;  %v845_v30 = vrot.slane %v792_v21, 2 }
  0x7c   : > { %v949_v31 = vmul.f32 %v2199_v53, %v2169_v22  ;;  %v706_v3 = vsel %vm338_vm0, %v703_v17, %v705_v25  ;;  %v752_v33 = vadd.f32 %v704_v28, %v612_v24  ;;  %v986_v34 = vunpack.c.l.bf16 %v1631_v23  ;;  %v1591_v17 = vld [vmem:[%s2082_s6 + $0x54] sm:$0xff]   ;;  %v1601_v25 = vld [vmem:[%s2082_s6 + $0x5c] sm:$0x1] }
  0x7d   : > { %v1002_v36 = vmul.f32 %v2190_v41, %v2185_v35  ;;  %v753_v37 = vadd.f32 %v706_v3, %v613_v16  ;;  %v844_v38 = vsel %vm479_vm1, %v842_v29, %v843_v26  ;;  %v846_v39 = vsel %vm479_vm1, %v843_v26, %v845_v30 }
  0x7e   : > { %v1003_v42 = vmul.f32 %v2199_v53, %v2185_v35  ;;  %v892_v8 = vadd.f32 %v844_v38, %v752_v33  ;;  %v1004_v59 = vmul.f32 %v2185_v35, %v986_v34  ;;  %v1126_v44 = vunpack.c.l.bf16 %v1639_v32 }
  0x7f   : > { %v1054_v43 = vrot.slane %v1002_v36, 1  ;;  %v893_v45 = vadd.f32 %v846_v39, %v753_v37  ;;  %v1143_v47 = vmul.f32 %v2199_v53, %v2166_v18  ;;  %v1144_v48 = vmul.f32 %v2166_v18, %v986_v34  ;;  %v1609_v36 = vld [vmem:[%s2082_s6 + $0x54] sm:$0xe] }
  0x80   : > { %v1055_v46 = vrot.slane %v1003_v42, 1  ;;  %v964_v49 = vadd.f32 %v948_v27, %v892_v8  ;;  %v1057_v50 = vrot.slane %v1004_v59, 1  ;;  %v1142_v51 = vmul.f32 %v2166_v18, %v1126_v44 }
  0x81   : > { %v266_v52 = vmul.f32 %v2237_v5, %v2095_v13  ;;  %v965_v62 = vadd.f32 %v949_v31, %v893_v45  ;;  %v1195_v56 = vrot.slane %v1143_v47, 2  ;;  %v1197_v60 = vrot.slane %v1144_v48, 2 }
  0x82   : > { %v1056_v55 = vsel %vm338_vm0, %v1054_v43, %v1055_v46  ;;  %v1058_v63 = vsel %vm338_vm0, %v1055_v46, %v1057_v50  ;;  %v1194_v1 = vrot.slane %v1142_v51, 2  ;;  %v267_v2 = vmul.f32 %v2240_v9, %v2095_v13 }
  0x83   : > { %v1104_v0 = vadd.f32 %v1056_v55, %v964_v49  ;;  %v1105_v4 = vadd.f32 %v1058_v63, %v965_v62  ;;  %v1198_v6 = vsel %vm479_vm1, %v1195_v56, %v1197_v60  ;;  %v284_v7 = vunpack.c.l.bf16 %v276_v54  ;;  %v1722_v49 = vld [vmem:[%s2082_s6 + $0x60] sm:$0xff]  }
  0x84   : > { %v308_v10 = vmul.f32 %v2237_v5, %v2099_v15  ;;  %v1196_v11 = vsel %vm479_vm1, %v1194_v1, %v1195_v56  ;;  %v309_v12 = vmul.f32 %v2240_v9, %v2099_v15  ;;  %v425_v14 = vunpack.c.l.bf16 %v417_v61 }
  0x85   : > { %v450_v16 = vmul.f32 %v2240_v9, %v2104_v20  ;;  %v1244_v19 = vadd.f32 %v1196_v11, %v1104_v0  ;;  %v1245_v21 = vadd.f32 %v1198_v6, %v1105_v4  ;;  %v310_v23 = vmul.f32 %v2099_v15, %v284_v7  ;;  %v1643_v11 = vld [vmem:[%s2082_s6 + $0x60] sm:$0xe] }
  0x86   : > { %v369_v24 = vrot.slane %v308_v10, 1  ;;  %v370_v26 = vrot.slane %v309_v12, 1  ;;  %v449_v5 = vmul.f32 %v2104_v20, %v425_v14  ;;  %v451_v27 = vmul.f32 %v2104_v20, %v284_v7 }
  0x87   : > { %v511_v28 = vrot.slane %v450_v16, 2  ;;  %v1258_v29 = vpack.c.bf16 %v1245_v21, %v1244_v19  ;;  %v372_v30 = vrot.slane %v310_v23, 1  ;;  %v584_v31 = vunpack.c.l.bf16 %v1591_v17 }
  0x88   : > { %v585_v32 = vunpack.c.h.bf16 %v1591_v17  ;;  %v371_v9 = vsel %vm338_vm0, %v369_v24, %v370_v26  ;;  %v510_v3 = vrot.slane %v449_v5, 2  ;;  %v513_v33 = vrot.slane %v451_v27, 2 }
  0x89   : > { %v638_v34 = vunpack.c.l.bf16 %v1601_v25  ;;  %1759 = vmatprep.mubr.bf16.mxu0 %v1258_v29  ;;  %v373_v37 = vsel %vm338_vm0, %v370_v26, %v372_v30  ;;  %v407_v38 = vadd.f32 %v371_v9, %v266_v52  ;;  %v604_v39 = vmul.f32 %v2124_v40, %v584_v31  ;;  %v273_v9 = vld [vmem:[%s2082_s6 + $0x2c] sm:$0x1] }
  0x8a   : > { %v605_v42 = vmul.f32 %v2124_v40, %v585_v32  ;;  %v408_v8 = vadd.f32 %v373_v37, %v267_v2  ;;  %v512_v59 = vsel %vm479_vm1, %v510_v3, %v511_v28  ;;  %v514_v43 = vsel %vm479_vm1, %v511_v28, %v513_v33  ;;  %v1635_v2 = vld [vmem:[%s2082_s6 + $0x68] sm:$0x1] }
  0x8b   : > { %v662_v44 = vmul.f32 %v2142_v57, %v584_v31  ;;  %v548_v45 = vadd.f32 %v512_v59, %v407_v38  ;;  %v663_v46 = vmul.f32 %v2142_v57, %v585_v32  ;;  %v664_v47 = vmul.f32 %v2142_v57, %v638_v34  ;;  %v224_v28 = vld [vmem:[%s2082_s6 + $0x24] sm:$0xff]  }
  0x8c   : > { %v778_v48 = vunpack.c.l.bf16 %v1609_v36  ;;  %v549_v50 = vadd.f32 %v514_v43, %v408_v8  ;;  %v803_v52 = vmul.f32 %v2145_v58, %v585_v32  ;;  %v804_v54 = vmul.f32 %v2145_v58, %v638_v34 }
  0x8d   : > { %v722_v51 = vrot.slane %v662_v44, 1  ;;  %v620_v62 = vadd.f32 %v604_v39, %v548_v45  ;;  %v723_v55 = vrot.slane %v663_v46, 1  ;;  %v725_v56 = vrot.slane %v664_v47, 1  ;;  %v414_v45 = vld [vmem:[%s2082_s6 + $0x24] sm:$0xe] }
  0x8e   : > { %v802_v60 = vmul.f32 %v2145_v58, %v778_v48  ;;  %v621_v61 = vadd.f32 %v605_v42, %v549_v50  ;;  %v863_v63 = vrot.slane %v803_v52, 2  ;;  %v865_v0 = vrot.slane %v804_v54, 2 }
  0x8f   : > { %v2444_v1 = vunpack.c.l.bf16 %v1722_v49  ;;  %v724_v4 = vsel %vm338_vm0, %v722_v51, %v723_v55  ;;  %v726_v6 = vsel %vm338_vm0, %v723_v55, %v725_v56  ;;  %v2449_v10 = vunpack.c.h.bf16 %v1722_v49 }
  0x90   : > { %v862_v7 = vrot.slane %v802_v60, 2  ;;  %v760_v12 = vadd.f32 %v724_v4, %v620_v62  ;;  %v761_v14 = vadd.f32 %v726_v6, %v621_v61  ;;  %v866_v16 = vsel %vm479_vm1, %v863_v63, %v865_v0 }
  0x91   : > { %v956_v17 = vmul.f32 %v2444_v1, %v2169_v22  ;;  %v957_v21 = vmul.f32 %v2449_v10, %v2169_v22  ;;  %v990_v23 = vunpack.c.l.bf16 %v1635_v2  ;;  %v1014_v24 = vmul.f32 %v2444_v1, %v2185_v35  ;;  %v1598_v2 = vld [vmem:[%s2082_s6 + $0x38] sm:$0x1] }
  0x92   : > { %v864_v19 = vsel %vm479_vm1, %v862_v7, %v863_v63  ;;  %v901_v26 = vadd.f32 %v866_v16, %v761_v14  ;;  %v1015_v5 = vmul.f32 %v2449_v10, %v2185_v35  ;;  %v1130_v27 = vunpack.c.l.bf16 %v1643_v11 }
  0x93   : > { %v900_v25 = vadd.f32 %v864_v19, %v760_v12  ;;  %v1016_v29 = vmul.f32 %v2185_v35, %v990_v23  ;;  %v1074_v30 = vrot.slane %v1014_v24, 1  ;;  %v1155_v31 = vmul.f32 %v2449_v10, %v2166_v18  ;;  %v1606_v19 = vld [vmem:[%s2082_s6 + $0x30] sm:$0xe] }
  0x94   : > { %v1156_v32 = vmul.f32 %v2166_v18, %v990_v23  ;;  %v973_v33 = vadd.f32 %v957_v21, %v901_v26  ;;  %v1075_v34 = vrot.slane %v1015_v5, 1  ;;  %v1154_v36 = vmul.f32 %v2166_v18, %v1130_v27 }
  0x95   : > { %v972_v3 = vadd.f32 %v956_v17, %v900_v25  ;;  %v1077_v37 = vrot.slane %v1016_v29, 1  ;;  %v1215_v38 = vrot.slane %v1155_v31, 2  ;;  %v240_v42 = vunpack.c.l.bf16 %v224_v28 }
  0x96   : > { %v1217_v39 = vrot.slane %v1156_v32, 2  ;;  %v1076_v8 = vsel %vm338_vm0, %v1074_v30, %v1075_v34  ;;  %v1214_v59 = vrot.slane %v1154_v36, 2  ;;  %v241_v43 = vunpack.c.h.bf16 %v224_v28 }
  0x97   : > { %v281_v44 = vunpack.c.l.bf16 %v273_v9  ;;  %v1078_v46 = vsel %vm338_vm0, %v1075_v34, %v1077_v37  ;;  %v1112_v47 = vadd.f32 %v1076_v8, %v972_v3  ;;  %v260_v49 = vmul.f32 %v2095_v13, %v240_v42  ;;  %v1619_v9 = vld [vmem:[%s2082_s6 + $0x3c] sm:$0xff]  }
  0x98   : > { %v1218_v48 = vsel %vm479_vm1, %v1215_v38, %v1217_v39  ;;  %v1113_v50 = vadd.f32 %v1078_v46, %v973_v33  ;;  %v1216_v18 = vsel %vm479_vm1, %v1214_v59, %v1215_v38  ;;  %v261_v51 = vmul.f32 %v2095_v13, %v241_v43 }
  0x99   : > { %v299_v52 = vmul.f32 %v2099_v15, %v240_v42  ;;  %v1252_v54 = vadd.f32 %v1216_v18, %v1112_v47  ;;  %v300_v62 = vmul.f32 %v2099_v15, %v241_v43  ;;  %v301_v55 = vmul.f32 %v2099_v15, %v281_v44 }
  0x9a   : > { %v422_v56 = vunpack.c.l.bf16 %v414_v45  ;;  %v1253_v60 = vadd.f32 %v1218_v48, %v1113_v50  ;;  %v441_v63 = vmul.f32 %v2104_v20, %v241_v43  ;;  %v442_v0 = vmul.f32 %v2104_v20, %v281_v44  ;;  %v1632_v44 = vld [vmem:[%s2082_s6 + $0x44] sm:$0x1] }
  0x9b   : > { %v354_v61 = vrot.slane %v299_v52, 1  ;;  %v355_v4 = vrot.slane %v300_v62, 1  ;;  %v357_v6 = vrot.slane %v301_v55, 1  ;;  %v598_v11 = vmul.f32 %v2190_v41, %v2124_v40 }
  0x9c   : > { %v440_v7 = vmul.f32 %v2104_v20, %v422_v56  ;;  %v1262_v12 = vpack.c.bf16 %v1253_v60, %v1252_v54  ;;  %v496_v14 = vrot.slane %v441_v63, 2  ;;  %v498_v16 = vrot.slane %v442_v0, 2  ;;  %v232_v0 = vld [vmem:[%s2082_s6 + $0x54] sm:$0xff]  }
  0x9d   : > { %v599_v17 = vmul.f32 %v2199_v53, %v2124_v40  ;;  %v356_v21 = vsel %vm338_vm0, %v354_v61, %v355_v4  ;;  %v358_v23 = vsel %vm338_vm0, %v355_v4, %v357_v6  ;;  %v635_v25 = vunpack.c.l.bf16 %v1598_v2 }
  0x9e   : > { %v495_v24 = vrot.slane %v440_v7, 2  ;;  %1767 = vmatprep.mubr.bf16.mxu1 %v1262_v12  ;;  %v401_v26 = vadd.f32 %v356_v21, %v260_v49  ;;  %v402_v5 = vadd.f32 %v358_v23, %v261_v51  ;;  %v499_v27 = vsel %vm479_vm1, %v496_v14, %v498_v16  ;;  %v1640_v51 = vld [vmem:[%s2082_s6 + $0x3c] sm:$0xe]  ;;  %v2517_v7 = vld [vmem:[%s2680_s1 + $0x8] ss:$0 sm:$0xff] }
  0x9f   : > { %v653_v28 = vmul.f32 %v2190_v41, %v2142_v57  ;;  %v654_v30 = vmul.f32 %v2199_v53, %v2142_v57  ;;  %v655_v31 = vmul.f32 %v2142_v57, %v635_v25  ;;  %v775_v32 = vunpack.c.l.bf16 %v1606_v19  ;;  %v277_v12 = vld [vmem:[%s2082_s6 + $0x5c] sm:$0x1] }
  0xa0   : > { %v497_v29 = vsel %vm479_vm1, %v495_v24, %v496_v14  ;;  %v543_v33 = vadd.f32 %v499_v27, %v402_v5  ;;  %v794_v36 = vmul.f32 %v2199_v53, %v2145_v58  ;;  %v795_v39 = vmul.f32 %v2145_v58, %v635_v25 }
  0xa1   : > { %v542_v3 = vadd.f32 %v497_v29, %v401_v26  ;;  %v707_v34 = vrot.slane %v653_v28, 1  ;;  %v708_v37 = vrot.slane %v654_v30, 1  ;;  %v710_v38 = vrot.slane %v655_v31, 1  ;;  %v418_v29 = vld [vmem:[%s2082_s6 + $0x54] sm:$0xe] }
  0xa2   : > { %v793_v41 = vmul.f32 %v2145_v58, %v775_v32  ;;  %v615_v8 = vadd.f32 %v599_v17, %v543_v33  ;;  %v848_v59 = vrot.slane %v794_v36, 2  ;;  %v930_v43 = vunpack.c.l.bf16 %v1619_v9 }
  0xa3   : > { %v614_v42 = vadd.f32 %v598_v11, %v542_v3  ;;  %v709_v45 = vsel %vm338_vm0, %v707_v34, %v708_v37  ;;  %v711_v46 = vsel %vm338_vm0, %v708_v37, %v710_v38  ;;  %v850_v48 = vrot.slane %v795_v39, 2 }
  0xa4   : > { %v847_v47 = vrot.slane %v793_v41, 2  ;;  %v755_v49 = vadd.f32 %v711_v46, %v615_v8  ;;  %v931_v50 = vunpack.c.h.bf16 %v1619_v9  ;;  %v950_v18 = vmul.f32 %v2169_v22, %v930_v43 }
  0xa5   : > { %v754_v53 = vadd.f32 %v709_v45, %v614_v42  ;;  %v851_v54 = vsel %vm479_vm1, %v848_v59, %v850_v48  ;;  %v987_v62 = vunpack.c.l.bf16 %v1632_v44  ;;  %v1005_v55 = vmul.f32 %v2185_v35, %v930_v43 }
  0xa6   : > { %v849_v52 = vsel %vm479_vm1, %v847_v47, %v848_v59  ;;  %v895_v60 = vadd.f32 %v851_v54, %v755_v49  ;;  %v951_v61 = vmul.f32 %v2169_v22, %v931_v50  ;;  %v1006_v63 = vmul.f32 %v2185_v35, %v931_v50  ;;  %v1602_v47 = vld [vmem:[%s2082_s6 + $0x68] sm:$0x1] }
  0xa7   : > { %v894_v56 = vadd.f32 %v849_v52, %v754_v53  ;;  %v1007_v2 = vmul.f32 %v2185_v35, %v987_v62  ;;  %v1059_v4 = vrot.slane %v1005_v55, 1  ;;  %v1127_v6 = vunpack.c.l.bf16 %v1640_v51 }
  0xa8   : > { %v1146_v11 = vmul.f32 %v2517_v7, %v931_v50  ;;  %v967_v16 = vadd.f32 %v951_v61, %v895_v60  ;;  %v1060_v17 = vrot.slane %v1006_v63, 1  ;;  %v1147_v19 = vmul.f32 %v2517_v7, %v987_v62  ;;  %v1610_v50 = vld [vmem:[%s2082_s6 + $0x60] sm:$0xe] }
  0xa9   : > { %v966_v14 = vadd.f32 %v950_v18, %v894_v56  ;;  %v1062_v21 = vrot.slane %v1007_v2, 1  ;;  %v1145_v23 = vmul.f32 %v2517_v7, %v1127_v6  ;;  %v248_v25 = vunpack.c.l.bf16 %v232_v0 }
  0xaa   : > { %v1200_v24 = vrot.slane %v1146_v11, 2  ;;  %v1061_v26 = vsel %vm338_vm0, %v1059_v4, %v1060_v17  ;;  %v1202_v5 = vrot.slane %v1147_v19, 2  ;;  %v249_v27 = vunpack.c.h.bf16 %v232_v0  ;;  %v1627_v0 = vld [vmem:[%s2082_s6 + $0x6c] sm:$0xff]  }
  0xab   : > { %v285_v28 = vunpack.c.l.bf16 %v277_v12  ;;  %v1063_v30 = vsel %vm338_vm0, %v1060_v17, %v1062_v21  ;;  %v1106_v31 = vadd.f32 %v1061_v26, %v966_v14  ;;  %v1199_v32 = vrot.slane %v1145_v23, 2 }
  0xac   : > { %v268_v9 = vmul.f32 %v2095_v13, %v248_v25  ;;  %v1107_v3 = vadd.f32 %v1063_v30, %v967_v16  ;;  %v1203_v33 = vsel %vm479_vm1, %v1200_v24, %v1202_v5  ;;  %v269_v34 = vmul.f32 %v2095_v13, %v249_v27 }
  0xad   : > { %v311_v36 = vmul.f32 %v2099_v15, %v248_v25  ;;  %v1201_v37 = vsel %vm479_vm1, %v1199_v32, %v1200_v24  ;;  %v312_v38 = vmul.f32 %v2099_v15, %v249_v27  ;;  %v313_v41 = vmul.f32 %v2099_v15, %v285_v28  ;;  %v1636_v24 = vld [vmem:[%s2082_s6 + $0x74] sm:$0x1] }
  0xae   : > { %v426_v39 = vunpack.c.l.bf16 %v418_v29  ;;  %v1246_v42 = vadd.f32 %v1201_v37, %v1106_v31  ;;  %v1247_v8 = vadd.f32 %v1203_v33, %v1107_v3  ;;  %v453_v43 = vmul.f32 %v2104_v20, %v249_v27  ;;  %v1644_v31 = vld [vmem:[%s2082_s6 + $0x6c] sm:$0xe]  ;;  %s202_s6 = sand.u32 1, %s1938_s16  }
  0xaf   : > { %v374_v59 = vrot.slane %v311_v36, 1  ;;  %v375_v44 = vrot.slane %v312_v38, 1  ;;  %v377_v45 = vrot.slane %v313_v41, 1  ;;  %v454_v13 = vmul.f32 %v2104_v20, %v285_v28  ;;  %s1572_s14 = sshll.u32 %s202_s6, 7  ;;  %s2628_s10 = scalar_lea.sflag [#allocation3], %s202_s6 }
  0xb0   : > { %v452_v46 = vmul.f32 %v2104_v20, %v426_v39  ;;  %v1259_v48 = vpack.c.bf16 %v1247_v8, %v1246_v42  ;;  %v516_v53 = vrot.slane %v453_v43, 2  ;;  %v606_v49 = vmul.f32 %v2444_v1, %v2124_v40  ;;  %s2584_s23 = scalar_lea.vmem [#allocation2], %s1572_s14  ;;  %s1876_s14 = scalar_lea.vmem %s1875_s13, 4096 }
  0xb1   : > { %v607_v15 = vmul.f32 %v2449_v10, %v2124_v40  ;;  %v376_v18 = vsel %vm338_vm0, %v374_v59, %v375_v44  ;;  %v378_v51 = vsel %vm338_vm0, %v375_v44, %v377_v45  ;;  %v518_v54 = vrot.slane %v454_v13, 2  ;;  %s1481_s18 = sshll.u32 %s2584_s23, 4  ;;  %s2622_s18 = int_to_ptr.vmem [resolvable:$true] %s1481_s18 }
  0xb2   : > { %v515_v52 = vrot.slane %v452_v46, 2  ;;  %1760 = vmatmul.mubr.bf16.gmra.mxu0 %v1259_v48  ;;  %v409_v62 = vadd.f32 %v376_v18, %v268_v9  ;;  %v410_v20 = vadd.f32 %v378_v51, %v269_v34  ;;  %v639_v55 = vunpack.c.l.bf16 %v1602_v47  ;;  %s1870_s11 = scalar_lea.vmem %s2622_s18, 2048  ;;  %p1877_p2 = scmp.lt.s32.totalorder %s2622_s18, %s1875_s13 }
  0xb3   : > { %v665_v56 = vmul.f32 %v2444_v1, %v2142_v57  ;;  %v519_v61 = vsel %vm479_vm1, %v516_v53, %v518_v54  ;;  %v666_v40 = vmul.f32 %v2449_v10, %v2142_v57  ;;  %v779_v63 = vunpack.c.l.bf16 %v1610_v50  ;;  %p1871_p13 = scmp.ne.s32.totalorder %s2622_s18, %s1870_s11  ;;  %p1878_p4 = scmp.lt.s32.totalorder %s1876_s14, %s1870_s11 }
  0xb4   : > { %v517_v60 = vsel %vm479_vm1, %v515_v52, %v516_v53  ;;  %v551_v4 = vadd.f32 %v519_v61, %v410_v20  ;;  %v667_v6 = vmul.f32 %v2142_v57, %v639_v55  ;;  %v806_v1 = vmul.f32 %v2449_v10, %v2145_v58 }
  0xb5   : > { %v550_v2 = vadd.f32 %v517_v60, %v409_v62  ;;  %v727_v11 = vrot.slane %v665_v56, 1  ;;  %v728_v12 = vrot.slane %v666_v40, 1  ;;  %v805_v14 = vmul.f32 %v2145_v58, %v779_v63  ;;  %p1872_p0 = pnand %p1871_p13, %p2043_p3  ;;  %p1879_p5 = por %p1878_p4, %p1877_p2 }
  0xb6   : > { %v807_v16 = vmul.f32 %v2145_v58, %v639_v55  ;;  %v623_v19 = vadd.f32 %v607_v15, %v551_v4  ;;  %v730_v21 = vrot.slane %v667_v6, 1  ;;  %v938_v23 = vunpack.c.l.bf16 %v1627_v0 }
  0xb7   : > { %v622_v17 = vadd.f32 %v606_v49, %v550_v2  ;;  %v729_v25 = vsel %vm338_vm0, %v727_v11, %v728_v12  ;;  %v867_v26 = vrot.slane %v805_v14, 2  ;;  %v868_v5 = vrot.slane %v806_v1, 2  ;;  %p1873_p1 = pneg %p1872_p0 }
  0xb8   : > { %v870_v57 = vrot.slane %v807_v16, 2  ;;  %v731_v27 = vsel %vm338_vm0, %v728_v12, %v730_v21  ;;  %v939_v29 = vunpack.c.h.bf16 %v1627_v0  ;;  %v958_v30 = vmul.f32 %v2169_v22, %v938_v23 }
  0xb9   : > { %v762_v28 = vadd.f32 %v729_v25, %v622_v17  ;;  %v763_v10 = vadd.f32 %v731_v27, %v623_v19  ;;  %v869_v58 = vsel %vm479_vm1, %v867_v26, %v868_v5  ;;  %v991_v9 = vunpack.c.l.bf16 %v1636_v24  ;;  %p1880_p6 = pnand %p1879_p5, %p1873_p1 }
  0xba   : > { %v871_v32 = vsel %vm479_vm1, %v868_v5, %v870_v57  ;;  %v959_v33 = vmul.f32 %v2169_v22, %v939_v29  ;;  %v1017_v34 = vmul.f32 %v2185_v35, %v938_v23  ;;  %v1018_v36 = vmul.f32 %v2185_v35, %v939_v29 }
  0xbb   : > { %v902_v3 = vadd.f32 %v869_v58, %v762_v28  ;;  %v903_v37 = vadd.f32 %v871_v32, %v763_v10  ;;  %v1019_v38 = vmul.f32 %v2185_v35, %v991_v9  ;;  %v1131_v41 = vunpack.c.l.bf16 %v1644_v31 }
  0xbc   : > { %v1158_v39 = vmul.f32 %v2517_v7, %v939_v29  ;;  %v1079_v8 = vrot.slane %v1017_v34, 1  ;;  %v1080_v59 = vrot.slane %v1018_v36, 1  ;;  %v1159_v43 = vmul.f32 %v2517_v7, %v991_v9 }
  0xbd   : > { %v974_v42 = vadd.f32 %v958_v30, %v902_v3  ;;  %v975_v44 = vadd.f32 %v959_v33, %v903_v37  ;;  %v1082_v45 = vrot.slane %v1019_v38, 1  ;;  %v1157_v22 = vmul.f32 %v2517_v7, %v1131_v41  ;;  %v2578_v7 = vld [vmem:[%s2682_s3] ss:$0 sm:$0xff] }
  0xbe   : > { %v1220_v46 = vrot.slane %v1158_v39, 2  ;;  %v1081_v13 = vsel %vm338_vm0, %v1079_v8, %v1080_v59  ;;  %v1222_v47 = vrot.slane %v1159_v43, 2 }
  0xbf   : > { %v1083_v35 = vsel %vm338_vm0, %v1080_v59, %v1082_v45  ;;  %v1114_v48 = vadd.f32 %v1081_v13, %v974_v42  ;;  %v1219_v53 = vrot.slane %v1157_v22, 2 }
  0xc0   : > { %v1115_v49 = vadd.f32 %v1083_v35, %v975_v44  ;;  %v1223_v15 = vsel %vm479_vm1, %v1220_v46, %v1222_v47 }
  0xc1   : > { %v1221_v50 = vsel %vm479_vm1, %v1219_v53, %v1220_v46 }
  0xc2   : > { %v1254_v18 = vadd.f32 %v1221_v50, %v1114_v48  ;;  %v1255_v51 = vadd.f32 %v1223_v15, %v1115_v49 }
  0xc4   : > { %v1263_v52 = vpack.c.bf16 %v1255_v51, %v1254_v18 }
  0xc6   : > { %1768 = vmatmul.mubr.bf16.gmra.mxu1 %v1263_v52 }
 0x122   : > { %v1757_v54 = vpop.f32.mrf.mxu0 }
 0x123   : > { %v1378_v62 = vadd.f32 %v1757_v54, %v2578_v7 }
 0x124   : > { %v1369_v20 = vpop.f32.mrf.mxu0 }
 0x125   : > { %v1434_v55 = vmax.f32 %v1378_v62, 0.0  ;;  %v1370_v56 = vadd.f32 %v2578_v7, %v1369_v20 }
 0x126   : > { %v1758_v60 = vpop.f32.mrf.mxu0 }
 0x127   : > { %1450 = vst [vmem:[%s2584_s23 + $0x10] sm:$0xff] %v1434_v55  ;;  %v1432_v61 = vmax.f32 %v1370_v56, 0.0  ;;  %v1381_v40 = vadd.f32 %v1758_v60, %v2578_v7 }
 0x128   : > { %v1372_v63 = vpop.f32.mrf.mxu0 }
 0x129   : > { %1448 = vst [vmem:[%s2584_s23] sm:$0xff] %v1432_v61  ;;  %v1435_v0 = vmax.f32 %v1381_v40, 0.0  ;;  %v1373_v2 = vadd.f32 %v2578_v7, %v1372_v63 }
 0x12b   : > { %1451 = vst [vmem:[%s2584_s23 + $0x18] sm:$0xff] %v1435_v0  ;;  %v1433_v4 = vmax.f32 %v1373_v2, 0.0 }
 0x12d   : > { %1449 = vst [vmem:[%s2584_s23 + $0x8] sm:$0xff] %v1433_v4 }
 0x136   : > { %v1765_v6 = vpop.f32.mrf.mxu1 }
 0x137   : > { %v1410_v11 = vadd.f32 %v1765_v6, %v2578_v7 }
 0x138   : > { %v1401_v12 = vpop.f32.mrf.mxu1 }
 0x139   : > { %v1442_v14 = vmax.f32 %v1410_v11, 0.0  ;;  %v1402_v1 = vadd.f32 %v2578_v7, %v1401_v12 }
 0x13a   : > { %v1766_v16 = vpop.f32.mrf.mxu1 }
 0x13b   : > { %1458 = vst [vmem:[%s2584_s23 + $0x50] sm:$0xff] %v1442_v14  ;;  %v1440_v17 = vmax.f32 %v1402_v1, 0.0  ;;  %v1413_v19 = vadd.f32 %v1766_v16, %v2578_v7 }
 0x13c   : > { %v1404_v21 = vpop.f32.mrf.mxu1 }
 0x13d   : > { %1456 = vst [vmem:[%s2584_s23 + $0x40] sm:$0xff] %v1440_v17  ;;  %v1443_v23 = vmax.f32 %v1413_v19, 0.0  ;;  %v1405_v24 = vadd.f32 %v2578_v7, %v1404_v21 }
 0x13f   : > { %1459 = vst [vmem:[%s2584_s23 + $0x58] sm:$0xff] %v1443_v23  ;;  %v1441_v25 = vmax.f32 %v1405_v24, 0.0 }
 0x141   : > { %1457 = vst [vmem:[%s2584_s23 + $0x48] sm:$0xff] %v1441_v25 }
 0x172   : > { %v1761_v26 = vpop.f32.mrf.mxu0 }
 0x173   : > { %v1394_v5 = vadd.f32 %v1761_v26, %v2578_v7 }
 0x174   : > { %v1385_v57 = vpop.f32.mrf.mxu0 }
 0x175   : > { %v1438_v27 = vmax.f32 %v1394_v5, 0.0  ;;  %v1386_v28 = vadd.f32 %v2578_v7, %v1385_v57 }
 0x176   : > { %v1762_v29 = vpop.f32.mrf.mxu0 }
 0x177   : > { %1454 = vst [vmem:[%s2584_s23 + $0x30] sm:$0xff] %v1438_v27  ;;  %v1436_v30 = vmax.f32 %v1386_v28, 0.0  ;;  %v1397_v31 = vadd.f32 %v1762_v29, %v2578_v7 }
 0x178   : > { %v1388_v10 = vpop.f32.mrf.mxu0 }
 0x179   : > { %1452 = vst [vmem:[%s2584_s23 + $0x20] sm:$0xff] %v1436_v30  ;;  %v1439_v58 = vmax.f32 %v1397_v31, 0.0  ;;  %v1389_v32 = vadd.f32 %v2578_v7, %v1388_v10 }
 0x17b   : > { %1455 = vst [vmem:[%s2584_s23 + $0x38] sm:$0xff] %v1439_v58  ;;  %v1437_v9 = vmax.f32 %v1389_v32, 0.0 }
 0x17d   : > { %1453 = vst [vmem:[%s2584_s23 + $0x28] sm:$0xff] %v1437_v9 }
 0x186   : > { %v1769_v3 = vpop.f32.mrf.mxu1 }
 0x187   : > { %v1426_v33 = vadd.f32 %v1769_v3, %v2578_v7 }
 0x188   : > { %v1417_v34 = vpop.f32.mrf.mxu1 }
 0x189   : > { %v1446_v36 = vmax.f32 %v1426_v33, 0.0  ;;  %v1418_v37 = vadd.f32 %v2578_v7, %v1417_v34 }
 0x18a   : > { %v1770_v38 = vpop.f32.mrf.mxu1 }
 0x18b   : > { %1462 = vst [vmem:[%s2584_s23 + $0x70] sm:$0xff] %v1446_v36  ;;  %v1444_v41 = vmax.f32 %v1418_v37, 0.0  ;;  %v1429_v39 = vadd.f32 %v1770_v38, %v2578_v7 }
 0x18c   : > { %v1420_v42 = vpop.f32.mrf.mxu1 }
 0x18d   : > { %1460 = vst [vmem:[%s2584_s23 + $0x60] sm:$0xff] %v1444_v41  ;;  %v1447_v8 = vmax.f32 %v1429_v39, 0.0  ;;  %v1421_v59 = vadd.f32 %v2578_v7, %v1420_v42 }
 0x18f   : > { %1463 = vst [vmem:[%s2584_s23 + $0x78] sm:$0xff] %v1447_v8  ;;  %v1445_v43 = vmax.f32 %v1421_v59, 0.0 }
 0x191   : > { %1461 = vst [vmem:[%s2584_s23 + $0x68] sm:$0xff] %v1445_v43 }
 0x192   : > { %1883 = shalt.err (!%p1880_p6)
}
 0x193   : > { %s1884_s6 = scalar_lea.hbm %s2620_s9, 2048  ;;  %s1888_s27 = scalar_lea.hbm %s2683_s4, 8192 }
 0x194   : > { %p1885_p7 = scmp.ne.s32.totalorder %s2620_s9, %s1884_s6  ;;  %p1889_p11 = scmp.lt.s32.totalorder %s2620_s9, %s2683_s4 }
 0x195   : > { %p1890_p12 = scmp.lt.s32.totalorder %s1888_s27, %s1884_s6 }
 0x196   : > { %p1886_p9 = pnand %p1885_p7, %p2043_p3 }
 0x197   : > { %p1891_p13 = por %p1890_p12, %p1889_p11 }
 0x198   : > { %p1887_p10 = pneg %p1886_p9 }
 0x19a   : > { %p1892_p0 = pnand %p1891_p13, %p1887_p10 }
 0x19c   : > { %1895 = shalt.err (!%p1892_p0)
}
 0x19d   : > { %s1965_s19 = smov 128   ;;  %s1966_s8 = smov 8  }
 0x19e   : > { %1788 = dma.vmem_to_hbm [thread:$0]  (%p2043_p3), %s2622_s18, 2048, %s2620_s9, %s2628_s10, %s1965_s19, %s1965_s19, %s1966_s8  }
 0x19f PF: > { %p1794_p1 = scmp.ge.s32.totalorder %s1962_s22, 2  ;;  %s1496_s11 = sand.u32 1, %s1934_s15  }
 0x1a0   : > { %s1497_s12 = scalar_lea.sflag [#allocation3], %s1496_s11 }
 0x1a1   : > { %p1791_p2 = pnand %p1794_p1, %p2052_p8 }
 0x1a3   : > { %p1792_p4 = pneg %p1791_p2 }
 0x1a5   : > { %1929 = dma.done.wait (%p1792_p4), %s1497_s12, 2048  }
 0x1a6   : > { %1931 = vsyncadd (%p1792_p4), %s1497_s12, 4294965248  ;;  %s17_s22 = sadd.s32 1, %s1962_s22   ;;  %s2686_s15 = smov %s1938_s16 }
 0x1a7   : > { %p14_p5 = scmp.ge.s32.totalorder %s17_s22, 6   ;;  %s2687_s16 = smov %s1942_s17 }
 0x1a8   : > { %s2688_s17 = smov %s2061_s7  ;;  %s2689_s18 = smov %s1954_s20 }
 0x1a9   : > { %s2690_s19 = smov %s1958_s21  ;;  %s2691_s20 = smov %s2694_s25 }
 0x1aa   : > { %s2692_s21 = smov %s2698_s26  ;;  %16 = sbr.rel (!%p14_p5) target bundleno = 5 (0x5), region = 74 }
 0x1af   :  { %1502 = vsyncpa [#allocation3], 1 }
 0x1b0   :  { %1504 = vsyncpa [#allocation3 + $0x1], 1 }

</bundles_post_ra>
